<compile_context>
chip_gen: v5e
topology: v5e:2x2
jax: 0.10.0
libtpu: 0.0.40
codegen_flags: <defaults>
</compile_context>

<pallas_src>
import jax
import jax.numpy as jnp
import numpy as np
from jax.experimental import pallas as pl
from jax.experimental.pallas import tpu as pltpu


def _basic_block_kernel(x_ref, w1_ref, w2_ref, wsc_ref, b1_ref, b2sc_ref,
                        ml_ref, mr_ref, out_ref, xpad_ref, o1pad_ref):
    """One grid step processes `nb` images, all channel-major / spatially flattened.

    x_ref     : (nb, Cin, H*W)      bf16  input slab
    w1_ref    : (3, Cout, 3*Cin)    bf16  conv1 weights, BN scale folded, K = (kw, ci)
    w2_ref    : (3, Cout, 3*Cout)   bf16  conv2 weights, BN scale folded
    wsc_ref   : (Cout, Cin)         bf16  1x1 projection-shortcut weights, BN folded
    b1_ref    : (Cout, 1)           f32   bn1 bias
    b2sc_ref  : (Cout, 1)           f32   bn2 + bn_sc bias (pre-summed)
    ml_ref    : (1, H*W)            bf16  0 where w == 0   (left-pad mask)
    mr_ref    : (1, H*W)            bf16  0 where w == W-1 (right-pad mask)
    out_ref   : (nb, Cout, H*W)     bf16  lane-dense output slab
    xpad_ref  : VMEM (Cin,  (H+2)*W) bf16  x with one zero row above/below (flattened)
    o1pad_ref : VMEM (Cout, (H+2)*W) bf16  relu(bn1(conv1 x)) staged the same way
    """
    nb = x_ref.shape[0]
    m = x_ref.shape[2]                       # H*W (lane dim)
    ww = (xpad_ref.shape[1] - m) // 2        # W  ((H+2)*W - H*W = 2*W)

    # Zero the scratches once per grid step: the vertical halo rows (first / last W
    # lanes) must be zero and are never touched by the interior stores below.
    xpad_ref[...] = jnp.zeros_like(xpad_ref)
    o1pad_ref[...] = jnp.zeros_like(o1pad_ref)

    # Hoist weight / bias / mask loads out of the per-image loop.
    w1 = [w1_ref[kh] for kh in range(3)]
    w2 = [w2_ref[kh] for kh in range(3)]
    wsc = wsc_ref[...]
    b1 = b1_ref[...]
    b2sc = b2sc_ref[...]
    maskl = ml_ref[...]
    maskr = mr_ref[...]

    def conv3x3(src_ref, w_kh):
        # src_ref: (C, (H+2)*W) bf16, zero halo rows.  For each kh the operand is a
        # plain lane slice; the kw=+-1 taps reuse it shifted by one lane with the
        # row-boundary columns masked (== horizontal zero padding).  kw is folded
        # into the contraction dim -> 3 bf16 MXU matmuls, f32 accumulation.
        c = src_ref.shape[0]
        zcol = jnp.zeros((c, 1), jnp.bfloat16)
        acc = None
        for kh in range(3):
            opc = src_ref[:, kh * ww:kh * ww + m]                  # rows h+kh-1
            opl = jnp.concatenate([zcol, opc[:, :m - 1]], axis=1) * maskl   # col w-1
            opr = jnp.concatenate([opc[:, 1:], zcol], axis=1) * maskr       # col w+1
            patch = jnp.concatenate([opl, opc, opr], axis=0)       # (3C, m), K=(kw,ci)
            part = jnp.dot(w_kh[kh], patch, preferred_element_type=jnp.float32)
            acc = part if acc is None else acc + part
        return acc                                                 # (Cout, m) f32

    for i in range(nb):                      # static unroll over images in this step
        x_i = x_ref[i]                                             # (Cin, m) bf16
        xpad_ref[:, ww:ww + m] = x_i

        # conv1 (3x3, pad 1) + folded bn1 + relu
        o1 = jnp.maximum(conv3x3(xpad_ref, w1) + b1, 0.0)
        o1pad_ref[:, ww:ww + m] = o1.astype(jnp.bfloat16)

        # conv2 (3x3, pad 1) + folded bn2 ; 1x1 projection shortcut + folded bn_sc
        o2 = conv3x3(o1pad_ref, w2)
        sc = jnp.dot(wsc, x_i, preferred_element_type=jnp.float32)

        # residual add + relu, lane-dense (Cout, H*W) bf16 store
        out_ref[i] = jnp.maximum(o2 + sc + b2sc, 0.0).astype(jnp.bfloat16)


def basic_block_forward(x_nchw, kparams):
    """x_nchw: (N, Cin, H, W) float32 (PyTorch convention). Returns (N, Cout, H, W) bf16."""
    w1k, w2k, wsck, b1k, b2sck = kparams
    N, Cin, H, W = x_nchw.shape
    Cout = wsck.shape[0]
    M = H * W

    # Channel-major end to end: only a free reshape + one bf16 cast on the input,
    # no NCHW<->NHWC transpose passes in HBM.
    x_flat = x_nchw.reshape(N, Cin, M).astype(jnp.bfloat16)

    # Horizontal-padding masks for the lane-shifted kw=0 / kw=2 operands.
    cols = np.arange(M) % W
    maskl = jnp.asarray(cols != 0, dtype=jnp.bfloat16).reshape(1, M)
    maskr = jnp.asarray(cols != W - 1, dtype=jnp.bfloat16).reshape(1, M)

    # Images per grid step: amortize per-step overhead but keep >= 2 "parallel"
    # grid steps so both TensorCores get work on v7x.
    nb = N // 2 if (N % 2 == 0 and N >= 4) else 1
    grid = N // nb

    grid_spec = pltpu.PrefetchScalarGridSpec(
        num_scalar_prefetch=0,
        grid=(grid,),
        in_specs=[
            pl.BlockSpec((nb, Cin, M), lambda n: (n, 0, 0)),
            pl.BlockSpec((3, Cout, 3 * Cin), lambda n: (0, 0, 0)),
            pl.BlockSpec((3, Cout, 3 * Cout), lambda n: (0, 0, 0)),
            pl.BlockSpec((Cout, Cin), lambda n: (0, 0)),
            pl.BlockSpec((Cout, 1), lambda n: (0, 0)),
            pl.BlockSpec((Cout, 1), lambda n: (0, 0)),
            pl.BlockSpec((1, M), lambda n: (0, 0)),
            pl.BlockSpec((1, M), lambda n: (0, 0)),
        ],
        out_specs=pl.BlockSpec((nb, Cout, M), lambda n: (n, 0, 0)),
        scratch_shapes=[
            pltpu.VMEM((Cin, (H + 2) * W), jnp.bfloat16),
            pltpu.VMEM((Cout, (H + 2) * W), jnp.bfloat16),
        ],
    )

    flops = 2 * N * M * Cout * (9 * Cin + 9 * Cout + Cin)
    bytes_accessed = (N * Cin * M * 2                               # x (bf16)
                      + N * Cout * M * 2                            # out (bf16)
                      + int(w1k.size + w2k.size + wsck.size) * 2    # weights (bf16)
                      + 2 * Cout * 4 + 2 * M * 2)                   # biases + masks

    out_flat = pl.pallas_call(
        _basic_block_kernel,
        out_shape=jax.ShapeDtypeStruct((N, Cout, M), jnp.bfloat16),
        grid_spec=grid_spec,
        compiler_params=pltpu.CompilerParams(dimension_semantics=("parallel",)),
        cost_estimate=pl.CostEstimate(flops=flops, transcendentals=0,
                                      bytes_accessed=bytes_accessed),
    )(x_flat, w1k, w2k, wsck, b1k, b2sck, maskl, maskr)

    # (N, Cout, H*W) -> (N, Cout, H, W): contiguous reshape, no HBM transpose pass.
    return out_flat.reshape(N, Cout, H, W)


# -------------------- deterministic parameter setup --------------------

_EPS = 1e-5


def init_params(key, in_planes, planes):
    ks = jax.random.split(key, 15)

    def conv_init(k, cout, cin, kh, kw):  # PyTorch OIHW, kaiming-uniform-ish
        bound = 1.0 / np.sqrt(cin * kh * kw)
        return jax.random.uniform(k, (cout, cin, kh, kw), jnp.float32, -bound, bound)

    def bn_init(k4, c):
        kg, kb, km, kv = k4
        gamma = jax.random.uniform(kg, (c,), jnp.float32, 0.5, 1.5)
        beta = 0.1 * jax.random.normal(kb, (c,), jnp.float32)
        mean = 0.1 * jax.random.normal(km, (c,), jnp.float32)
        var = jax.random.uniform(kv, (c,), jnp.float32, 0.5, 1.5)
        return gamma, beta, mean, var

    w1 = conv_init(ks[0], planes, in_planes, 3, 3)
    w2 = conv_init(ks[1], planes, planes, 3, 3)
    wsc = conv_init(ks[2], planes, in_planes, 1, 1)
    bn1 = bn_init(ks[3:7], planes)
    bn2 = bn_init(ks[7:11], planes)
    bnsc = bn_init(ks[11:15], planes)

    torch_params = dict(w1=w1, w2=w2, wsc=wsc, bn1=bn1, bn2=bn2, bnsc=bnsc)

    def fold(bn):
        g, b, m, v = bn
        scale = g / jnp.sqrt(v + _EPS)
        bias = b - m * scale
        return scale, bias

    s1, b1 = fold(bn1)
    s2, b2 = fold(bn2)
    ssc, bsc = fold(bnsc)

    # Fold BN scales into the conv weights in f32, then pack for the kernel:
    # OIHW -> (kh, Cout, 3*Cin) with kw folded into K (column order kw-major,
    # cin-minor -- must match the [opl, opc, opr] concat in the kernel), bf16.
    def pack3x3(w_oihw, scale):
        cout, cin = w_oihw.shape[0], w_oihw.shape[1]
        w_s = w_oihw * scale[:, None, None, None]
        return jnp.transpose(w_s, (2, 0, 3, 1)).reshape(3, cout, 3 * cin).astype(jnp.bfloat16)

    kernel_params = (
        pack3x3(w1, s1),
        pack3x3(w2, s2),
        (wsc[:, :, 0, 0] * ssc[:, None]).astype(jnp.bfloat16),   # (Cout, Cin)
        b1.reshape(planes, 1),
        (b2 + bsc).reshape(planes, 1),
    )
    return torch_params, kernel_params


# -------------------- pure-JAX reference (for correctness check) --------------------

def reference_forward(x, p):
    def bn(y, bnp):
        g, b, m, v = (t[None, :, None, None] for t in bnp)
        return (y - m) / jnp.sqrt(v + _EPS) * g + b

    def conv(y, w, pad):
        return jax.lax.conv_general_dilated(
            y, w, (1, 1), ((pad, pad), (pad, pad)),
            dimension_numbers=('NCHW', 'OIHW', 'NCHW'),
            precision=jax.lax.Precision.HIGHEST)

    out = jax.nn.relu(bn(conv(x, p['w1'], 1), p['bn1']))
    out = bn(conv(out, p['w2'], 1), p['bn2'])
    sc = bn(conv(x, p['wsc'], 0), p['bnsc'])
    return jax.nn.relu(out + sc)


if __name__ == "__main__":
    key = jax.random.PRNGKey(0)
    k_x, k_p = jax.random.split(key)

    N, in_planes, H, W = 4, 4, 16, 16
    planes = 8  # in_planes != planes -> projection (1x1 conv + BN) shortcut

    x = jax.random.normal(k_x, (N, in_planes, H, W), jnp.float32)
    torch_params, kernel_params = init_params(k_p, in_planes, planes)

    out = basic_block_forward(x, kernel_params)
    out = jax.block_until_ready(out)

    ref = reference_forward(x, torch_params)
    # Kernel feeds the MXU bf16 inputs / bf16 output (f32 accumulate); reference is
    # full f32, so a looser tolerance covers the bf16 rounding through two convs.
    np.testing.assert_allclose(np.asarray(out.astype(jnp.float32)), np.asarray(ref),
                               rtol=5e-2, atol=5e-2)
    print("KERNEL_OK")
</pallas_src>

<mosaic_0001>
module attributes {stable_mosaic.version = 11 : i64} {
  func.func @_basic_block_kernel(%arg0: i32, %arg1: memref<2x4x256xbf16, #tpu.memory_space<vmem>>, %arg2: memref<3x8x12xbf16, #tpu.memory_space<vmem>>, %arg3: memref<3x8x24xbf16, #tpu.memory_space<vmem>>, %arg4: memref<8x4xbf16, #tpu.memory_space<vmem>>, %arg5: memref<8x1xf32, #tpu.memory_space<vmem>>, %arg6: memref<8x1xf32, #tpu.memory_space<vmem>>, %arg7: memref<1x256xbf16, #tpu.memory_space<vmem>>, %arg8: memref<1x256xbf16, #tpu.memory_space<vmem>>, %arg9: memref<2x8x256xbf16, #tpu.memory_space<vmem>>, %arg10: memref<4x288xbf16, #tpu.memory_space<vmem>>, %arg11: memref<8x288xbf16, #tpu.memory_space<vmem>>) attributes {dimension_semantics = [#tpu.dimension_semantics<parallel>], iteration_bounds = array<i64: 2>, scalar_prefetch = 0 : i64, scratch_operands = 2 : i64, tpu.core_type = #tpu.core_type<tc>, window_params = [{transform_indices = @transform_0, window_bounds = array<i64: 2, 4, 256>}, {pipeline_mode = #tpu.pipeline_mode<synchronous>, transform_indices = @transform_1, window_bounds = array<i64: 3, 8, 12>}, {pipeline_mode = #tpu.pipeline_mode<synchronous>, transform_indices = @transform_2, window_bounds = array<i64: 3, 8, 24>}, {pipeline_mode = #tpu.pipeline_mode<synchronous>, transform_indices = @transform_3, window_bounds = array<i64: 8, 4>}, {pipeline_mode = #tpu.pipeline_mode<synchronous>, transform_indices = @transform_4, window_bounds = array<i64: 8, 1>}, {pipeline_mode = #tpu.pipeline_mode<synchronous>, transform_indices = @transform_5, window_bounds = array<i64: 8, 1>}, {pipeline_mode = #tpu.pipeline_mode<synchronous>, transform_indices = @transform_6, window_bounds = array<i64: 1, 256>}, {pipeline_mode = #tpu.pipeline_mode<synchronous>, transform_indices = @transform_7, window_bounds = array<i64: 1, 256>}, {transform_indices = @transform_8, window_bounds = array<i64: 2, 8, 256>}]} {
    %cst = arith.constant 0.000000e+00 : bf16
    %0 = vector.broadcast %cst : bf16 to vector<4x288xbf16>
    %c0 = arith.constant 0 : index
    %c0_0 = arith.constant 0 : index
    %1 = vector.load %arg10[%c0, %c0_0] : memref<4x288xbf16, #tpu.memory_space<vmem>>, vector<4x288xbf16>
    tpu.vector_store %arg10[%c0, %c0_0], %0 {strides = array<i32>} : memref<4x288xbf16, #tpu.memory_space<vmem>>, vector<4x288xbf16>,
    %cst_1 = arith.constant 0.000000e+00 : bf16
    %2 = vector.broadcast %cst_1 : bf16 to vector<8x288xbf16>
    %c0_2 = arith.constant 0 : index
    %c0_3 = arith.constant 0 : index
    %3 = vector.load %arg11[%c0_2, %c0_3] : memref<8x288xbf16, #tpu.memory_space<vmem>>, vector<8x288xbf16>
    tpu.vector_store %arg11[%c0_2, %c0_3], %2 {strides = array<i32>} : memref<8x288xbf16, #tpu.memory_space<vmem>>, vector<8x288xbf16>,
    %c0_4 = arith.constant 0 : index
    %c0_5 = arith.constant 0 : index
    %c0_6 = arith.constant 0 : index
    %4 = vector.load %arg2[%c0_4, %c0_5, %c0_6] : memref<3x8x12xbf16, #tpu.memory_space<vmem>>, vector<1x8x12xbf16>
    %5 = vector.shape_cast %4 : vector<1x8x12xbf16> to vector<8x12xbf16>
    %c1 = arith.constant 1 : index
    %c0_7 = arith.constant 0 : index
    %c0_8 = arith.constant 0 : index
    %6 = vector.load %arg2[%c1, %c0_7, %c0_8] : memref<3x8x12xbf16, #tpu.memory_space<vmem>>, vector<1x8x12xbf16>
    %7 = vector.shape_cast %6 : vector<1x8x12xbf16> to vector<8x12xbf16>
    %c2 = arith.constant 2 : index
    %c0_9 = arith.constant 0 : index
    %c0_10 = arith.constant 0 : index
    %8 = vector.load %arg2[%c2, %c0_9, %c0_10] : memref<3x8x12xbf16, #tpu.memory_space<vmem>>, vector<1x8x12xbf16>
    %9 = vector.shape_cast %8 : vector<1x8x12xbf16> to vector<8x12xbf16>
    %c0_11 = arith.constant 0 : index
    %c0_12 = arith.constant 0 : index
    %c0_13 = arith.constant 0 : index
    %10 = vector.load %arg3[%c0_11, %c0_12, %c0_13] : memref<3x8x24xbf16, #tpu.memory_space<vmem>>, vector<1x8x24xbf16>
    %11 = vector.shape_cast %10 : vector<1x8x24xbf16> to vector<8x24xbf16>
    %c1_14 = arith.constant 1 : index
    %c0_15 = arith.constant 0 : index
    %c0_16 = arith.constant 0 : index
    %12 = vector.load %arg3[%c1_14, %c0_15, %c0_16] : memref<3x8x24xbf16, #tpu.memory_space<vmem>>, vector<1x8x24xbf16>
    %13 = vector.shape_cast %12 : vector<1x8x24xbf16> to vector<8x24xbf16>
    %c2_17 = arith.constant 2 : index
    %c0_18 = arith.constant 0 : index
    %c0_19 = arith.constant 0 : index
    %14 = vector.load %arg3[%c2_17, %c0_18, %c0_19] : memref<3x8x24xbf16, #tpu.memory_space<vmem>>, vector<1x8x24xbf16>
    %15 = vector.shape_cast %14 : vector<1x8x24xbf16> to vector<8x24xbf16>
    %c0_20 = arith.constant 0 : index
    %c0_21 = arith.constant 0 : index
    %16 = vector.load %arg4[%c0_20, %c0_21] : memref<8x4xbf16, #tpu.memory_space<vmem>>, vector<8x4xbf16>
    %c0_22 = arith.constant 0 : index
    %c0_23 = arith.constant 0 : index
    %17 = vector.load %arg5[%c0_22, %c0_23] : memref<8x1xf32, #tpu.memory_space<vmem>>, vector<8x1xf32>
    %c0_24 = arith.constant 0 : index
    %c0_25 = arith.constant 0 : index
    %18 = vector.load %arg6[%c0_24, %c0_25] : memref<8x1xf32, #tpu.memory_space<vmem>>, vector<8x1xf32>
    %c0_26 = arith.constant 0 : index
    %c0_27 = arith.constant 0 : index
    %19 = vector.load %arg7[%c0_26, %c0_27] : memref<1x256xbf16, #tpu.memory_space<vmem>>, vector<1x256xbf16>
    %c0_28 = arith.constant 0 : index
    %c0_29 = arith.constant 0 : index
    %20 = vector.load %arg8[%c0_28, %c0_29] : memref<1x256xbf16, #tpu.memory_space<vmem>>, vector<1x256xbf16>
    %c0_30 = arith.constant 0 : index
    %c0_31 = arith.constant 0 : index
    %c0_32 = arith.constant 0 : index
    %21 = vector.load %arg1[%c0_30, %c0_31, %c0_32] : memref<2x4x256xbf16, #tpu.memory_space<vmem>>, vector<1x4x256xbf16>
    %22 = vector.shape_cast %21 : vector<1x4x256xbf16> to vector<4x256xbf16>
    %c0_33 = arith.constant 0 : index
    %c16 = arith.constant 16 : index
    %23 = vector.load %arg10[%c0_33, %c16] : memref<4x288xbf16, #tpu.memory_space<vmem>>, vector<4x256xbf16>
    tpu.vector_store %arg10[%c0_33, %c16], %22 {strides = array<i32>} : memref<4x288xbf16, #tpu.memory_space<vmem>>, vector<4x256xbf16>,
    %cst_34 = arith.constant 0.000000e+00 : bf16
    %24 = vector.broadcast %cst_34 : bf16 to vector<4x1xbf16>
    %c0_35 = arith.constant 0 : index
    %c0_36 = arith.constant 0 : index
    %25 = vector.load %arg10[%c0_35, %c0_36] : memref<4x288xbf16, #tpu.memory_space<vmem>>, vector<4x256xbf16>
    %26 = vector.extract_strided_slice %25 {offsets = [0, 0], sizes = [4, 255], strides = [1, 1]} : vector<4x256xbf16> to vector<4x255xbf16>
    %27 = tpu.concatenate %24, %26 in 1 : vector<4x1xbf16>, vector<4x255xbf16> -> vector<4x256xbf16>
    %28 = vector.broadcast %19 : vector<1x256xbf16> to vector<4x256xbf16>
    %29 = arith.mulf %27, %28 : vector<4x256xbf16>
    %30 = vector.extract_strided_slice %25 {offsets = [0, 1], sizes = [4, 255], strides = [1, 1]} : vector<4x256xbf16> to vector<4x255xbf16>
    %31 = tpu.concatenate %30, %24 in 1 : vector<4x255xbf16>, vector<4x1xbf16> -> vector<4x256xbf16>
    %32 = vector.broadcast %20 : vector<1x256xbf16> to vector<4x256xbf16>
    %33 = arith.mulf %31, %32 : vector<4x256xbf16>
    %34 = tpu.concatenate %29, %25, %33 in 0 : vector<4x256xbf16>, vector<4x256xbf16>, vector<4x256xbf16> -> vector<12x256xbf16>
    %cst_37 = arith.constant dense<0.000000e+00> : vector<8x256xf32>
    %35 = tpu.matmul %5, %34, %cst_37 {dimension_numbers = #tpu.dot_dimension_numbers<[1], [0], [0], [1], [0, 0, 1, 1], [], []>} : vector<8x12xbf16>, vector<12x256xbf16>, vector<8x256xf32> -> vector<8x256xf32>
    %c0_38 = arith.constant 0 : index
    %c16_39 = arith.constant 16 : index
    %36 = vector.load %arg10[%c0_38, %c16_39] : memref<4x288xbf16, #tpu.memory_space<vmem>>, vector<4x256xbf16>
    %37 = vector.extract_strided_slice %36 {offsets = [0, 0], sizes = [4, 255], strides = [1, 1]} : vector<4x256xbf16> to vector<4x255xbf16>
    %38 = tpu.concatenate %24, %37 in 1 : vector<4x1xbf16>, vector<4x255xbf16> -> vector<4x256xbf16>
    %39 = vector.broadcast %19 : vector<1x256xbf16> to vector<4x256xbf16>
    %40 = arith.mulf %38, %39 : vector<4x256xbf16>
    %41 = vector.extract_strided_slice %36 {offsets = [0, 1], sizes = [4, 255], strides = [1, 1]} : vector<4x256xbf16> to vector<4x255xbf16>
    %42 = tpu.concatenate %41, %24 in 1 : vector<4x255xbf16>, vector<4x1xbf16> -> vector<4x256xbf16>
    %43 = vector.broadcast %20 : vector<1x256xbf16> to vector<4x256xbf16>
    %44 = arith.mulf %42, %43 : vector<4x256xbf16>
    %45 = tpu.concatenate %40, %36, %44 in 0 : vector<4x256xbf16>, vector<4x256xbf16>, vector<4x256xbf16> -> vector<12x256xbf16>
    %cst_40 = arith.constant dense<0.000000e+00> : vector<8x256xf32>
    %46 = tpu.matmul %7, %45, %cst_40 {dimension_numbers = #tpu.dot_dimension_numbers<[1], [0], [0], [1], [0, 0, 1, 1], [], []>} : vector<8x12xbf16>, vector<12x256xbf16>, vector<8x256xf32> -> vector<8x256xf32>
    %47 = arith.addf %35, %46 : vector<8x256xf32>
    %c0_41 = arith.constant 0 : index
    %c32 = arith.constant 32 : index
    %48 = vector.load %arg10[%c0_41, %c32] : memref<4x288xbf16, #tpu.memory_space<vmem>>, vector<4x256xbf16>
    %49 = vector.extract_strided_slice %48 {offsets = [0, 0], sizes = [4, 255], strides = [1, 1]} : vector<4x256xbf16> to vector<4x255xbf16>
    %50 = tpu.concatenate %24, %49 in 1 : vector<4x1xbf16>, vector<4x255xbf16> -> vector<4x256xbf16>
    %51 = vector.broadcast %19 : vector<1x256xbf16> to vector<4x256xbf16>
    %52 = arith.mulf %50, %51 : vector<4x256xbf16>
    %53 = vector.extract_strided_slice %48 {offsets = [0, 1], sizes = [4, 255], strides = [1, 1]} : vector<4x256xbf16> to vector<4x255xbf16>
    %54 = tpu.concatenate %53, %24 in 1 : vector<4x255xbf16>, vector<4x1xbf16> -> vector<4x256xbf16>
    %55 = vector.broadcast %20 : vector<1x256xbf16> to vector<4x256xbf16>
    %56 = arith.mulf %54, %55 : vector<4x256xbf16>
    %57 = tpu.concatenate %52, %48, %56 in 0 : vector<4x256xbf16>, vector<4x256xbf16>, vector<4x256xbf16> -> vector<12x256xbf16>
    %cst_42 = arith.constant dense<0.000000e+00> : vector<8x256xf32>
    %58 = tpu.matmul %9, %57, %cst_42 {dimension_numbers = #tpu.dot_dimension_numbers<[1], [0], [0], [1], [0, 0, 1, 1], [], []>} : vector<8x12xbf16>, vector<12x256xbf16>, vector<8x256xf32> -> vector<8x256xf32>
    %59 = arith.addf %47, %58 : vector<8x256xf32>
    %60 = vector.broadcast %17 : vector<8x1xf32> to vector<8x256xf32>
    %61 = arith.addf %59, %60 : vector<8x256xf32>
    %cst_43 = arith.constant 0.000000e+00 : f32
    %62 = vector.broadcast %cst_43 : f32 to vector<8x256xf32>
    %63 = arith.maximumf %61, %62 : vector<8x256xf32>
    %64 = arith.truncf %63 : vector<8x256xf32> to vector<8x256xbf16>
    %c0_44 = arith.constant 0 : index
    %c16_45 = arith.constant 16 : index
    %65 = vector.load %arg11[%c0_44, %c16_45] : memref<8x288xbf16, #tpu.memory_space<vmem>>, vector<8x256xbf16>
    tpu.vector_store %arg11[%c0_44, %c16_45], %64 {strides = array<i32>} : memref<8x288xbf16, #tpu.memory_space<vmem>>, vector<8x256xbf16>,
    %cst_46 = arith.constant 0.000000e+00 : bf16
    %66 = vector.broadcast %cst_46 : bf16 to vector<8x1xbf16>
    %c0_47 = arith.constant 0 : index
    %c0_48 = arith.constant 0 : index
    %67 = vector.load %arg11[%c0_47, %c0_48] : memref<8x288xbf16, #tpu.memory_space<vmem>>, vector<8x256xbf16>
    %68 = vector.extract_strided_slice %67 {offsets = [0, 0], sizes = [8, 255], strides = [1, 1]} : vector<8x256xbf16> to vector<8x255xbf16>
    %69 = tpu.concatenate %66, %68 in 1 : vector<8x1xbf16>, vector<8x255xbf16> -> vector<8x256xbf16>
    %70 = vector.broadcast %19 : vector<1x256xbf16> to vector<8x256xbf16>
    %71 = arith.mulf %69, %70 : vector<8x256xbf16>
    %72 = vector.extract_strided_slice %67 {offsets = [0, 1], sizes = [8, 255], strides = [1, 1]} : vector<8x256xbf16> to vector<8x255xbf16>
    %73 = tpu.concatenate %72, %66 in 1 : vector<8x255xbf16>, vector<8x1xbf16> -> vector<8x256xbf16>
    %74 = vector.broadcast %20 : vector<1x256xbf16> to vector<8x256xbf16>
    %75 = arith.mulf %73, %74 : vector<8x256xbf16>
    %76 = tpu.concatenate %71, %67, %75 in 0 : vector<8x256xbf16>, vector<8x256xbf16>, vector<8x256xbf16> -> vector<24x256xbf16>
    %cst_49 = arith.constant dense<0.000000e+00> : vector<8x256xf32>
    %77 = tpu.matmul %11, %76, %cst_49 {dimension_numbers = #tpu.dot_dimension_numbers<[1], [0], [0], [1], [0, 0, 1, 1], [], []>} : vector<8x24xbf16>, vector<24x256xbf16>, vector<8x256xf32> -> vector<8x256xf32>
    %c0_50 = arith.constant 0 : index
    %c16_51 = arith.constant 16 : index
    %78 = vector.load %arg11[%c0_50, %c16_51] : memref<8x288xbf16, #tpu.memory_space<vmem>>, vector<8x256xbf16>
    %79 = vector.extract_strided_slice %78 {offsets = [0, 0], sizes = [8, 255], strides = [1, 1]} : vector<8x256xbf16> to vector<8x255xbf16>
    %80 = tpu.concatenate %66, %79 in 1 : vector<8x1xbf16>, vector<8x255xbf16> -> vector<8x256xbf16>
    %81 = vector.broadcast %19 : vector<1x256xbf16> to vector<8x256xbf16>
    %82 = arith.mulf %80, %81 : vector<8x256xbf16>
    %83 = vector.extract_strided_slice %78 {offsets = [0, 1], sizes = [8, 255], strides = [1, 1]} : vector<8x256xbf16> to vector<8x255xbf16>
    %84 = tpu.concatenate %83, %66 in 1 : vector<8x255xbf16>, vector<8x1xbf16> -> vector<8x256xbf16>
    %85 = vector.broadcast %20 : vector<1x256xbf16> to vector<8x256xbf16>
    %86 = arith.mulf %84, %85 : vector<8x256xbf16>
    %87 = tpu.concatenate %82, %78, %86 in 0 : vector<8x256xbf16>, vector<8x256xbf16>, vector<8x256xbf16> -> vector<24x256xbf16>
    %cst_52 = arith.constant dense<0.000000e+00> : vector<8x256xf32>
    %88 = tpu.matmul %13, %87, %cst_52 {dimension_numbers = #tpu.dot_dimension_numbers<[1], [0], [0], [1], [0, 0, 1, 1], [], []>} : vector<8x24xbf16>, vector<24x256xbf16>, vector<8x256xf32> -> vector<8x256xf32>
    %89 = arith.addf %77, %88 : vector<8x256xf32>
    %c0_53 = arith.constant 0 : index
    %c32_54 = arith.constant 32 : index
    %90 = vector.load %arg11[%c0_53, %c32_54] : memref<8x288xbf16, #tpu.memory_space<vmem>>, vector<8x256xbf16>
    %91 = vector.extract_strided_slice %90 {offsets = [0, 0], sizes = [8, 255], strides = [1, 1]} : vector<8x256xbf16> to vector<8x255xbf16>
    %92 = tpu.concatenate %66, %91 in 1 : vector<8x1xbf16>, vector<8x255xbf16> -> vector<8x256xbf16>
    %93 = vector.broadcast %19 : vector<1x256xbf16> to vector<8x256xbf16>
    %94 = arith.mulf %92, %93 : vector<8x256xbf16>
    %95 = vector.extract_strided_slice %90 {offsets = [0, 1], sizes = [8, 255], strides = [1, 1]} : vector<8x256xbf16> to vector<8x255xbf16>
    %96 = tpu.concatenate %95, %66 in 1 : vector<8x255xbf16>, vector<8x1xbf16> -> vector<8x256xbf16>
    %97 = vector.broadcast %20 : vector<1x256xbf16> to vector<8x256xbf16>
    %98 = arith.mulf %96, %97 : vector<8x256xbf16>
    %99 = tpu.concatenate %94, %90, %98 in 0 : vector<8x256xbf16>, vector<8x256xbf16>, vector<8x256xbf16> -> vector<24x256xbf16>
    %cst_55 = arith.constant dense<0.000000e+00> : vector<8x256xf32>
    %100 = tpu.matmul %15, %99, %cst_55 {dimension_numbers = #tpu.dot_dimension_numbers<[1], [0], [0], [1], [0, 0, 1, 1], [], []>} : vector<8x24xbf16>, vector<24x256xbf16>, vector<8x256xf32> -> vector<8x256xf32>
    %101 = arith.addf %89, %100 : vector<8x256xf32>
    %cst_56 = arith.constant dense<0.000000e+00> : vector<8x256xf32>
    %102 = tpu.matmul %16, %22, %cst_56 {dimension_numbers = #tpu.dot_dimension_numbers<[1], [0], [0], [1], [0, 0, 1, 1], [], []>} : vector<8x4xbf16>, vector<4x256xbf16>, vector<8x256xf32> -> vector<8x256xf32>
    %103 = arith.addf %101, %102 : vector<8x256xf32>
    %104 = vector.broadcast %18 : vector<8x1xf32> to vector<8x256xf32>
    %105 = arith.addf %103, %104 : vector<8x256xf32>
    %cst_57 = arith.constant 0.000000e+00 : f32
    %106 = vector.broadcast %cst_57 : f32 to vector<8x256xf32>
    %107 = arith.maximumf %105, %106 : vector<8x256xf32>
    %108 = arith.truncf %107 : vector<8x256xf32> to vector<8x256xbf16>
    %c0_58 = arith.constant 0 : index
    %c0_59 = arith.constant 0 : index
    %c0_60 = arith.constant 0 : index
    %109 = vector.load %arg9[%c0_58, %c0_59, %c0_60] : memref<2x8x256xbf16, #tpu.memory_space<vmem>>, vector<1x8x256xbf16>
    %110 = vector.shape_cast %109 : vector<1x8x256xbf16> to vector<8x256xbf16>
    %111 = vector.shape_cast %108 : vector<8x256xbf16> to vector<1x8x256xbf16>
    tpu.vector_store %arg9[%c0_58, %c0_59, %c0_60], %111 {strides = array<i32>} : memref<2x8x256xbf16, #tpu.memory_space<vmem>>, vector<1x8x256xbf16>,
    %c1_61 = arith.constant 1 : index
    %c0_62 = arith.constant 0 : index
    %c0_63 = arith.constant 0 : index
    %112 = vector.load %arg1[%c1_61, %c0_62, %c0_63] : memref<2x4x256xbf16, #tpu.memory_space<vmem>>, vector<1x4x256xbf16>
    %113 = vector.shape_cast %112 : vector<1x4x256xbf16> to vector<4x256xbf16>
    %c0_64 = arith.constant 0 : index
    %c16_65 = arith.constant 16 : index
    %114 = vector.load %arg10[%c0_64, %c16_65] : memref<4x288xbf16, #tpu.memory_space<vmem>>, vector<4x256xbf16>
    tpu.vector_store %arg10[%c0_64, %c16_65], %113 {strides = array<i32>} : memref<4x288xbf16, #tpu.memory_space<vmem>>, vector<4x256xbf16>,
    %cst_66 = arith.constant 0.000000e+00 : bf16
    %115 = vector.broadcast %cst_66 : bf16 to vector<4x1xbf16>
    %c0_67 = arith.constant 0 : index
    %c0_68 = arith.constant 0 : index
    %116 = vector.load %arg10[%c0_67, %c0_68] : memref<4x288xbf16, #tpu.memory_space<vmem>>, vector<4x256xbf16>
    %117 = vector.extract_strided_slice %116 {offsets = [0, 0], sizes = [4, 255], strides = [1, 1]} : vector<4x256xbf16> to vector<4x255xbf16>
    %118 = tpu.concatenate %115, %117 in 1 : vector<4x1xbf16>, vector<4x255xbf16> -> vector<4x256xbf16>
    %119 = vector.broadcast %19 : vector<1x256xbf16> to vector<4x256xbf16>
    %120 = arith.mulf %118, %119 : vector<4x256xbf16>
    %121 = vector.extract_strided_slice %116 {offsets = [0, 1], sizes = [4, 255], strides = [1, 1]} : vector<4x256xbf16> to vector<4x255xbf16>
    %122 = tpu.concatenate %121, %115 in 1 : vector<4x255xbf16>, vector<4x1xbf16> -> vector<4x256xbf16>
    %123 = vector.broadcast %20 : vector<1x256xbf16> to vector<4x256xbf16>
    %124 = arith.mulf %122, %123 : vector<4x256xbf16>
    %125 = tpu.concatenate %120, %116, %124 in 0 : vector<4x256xbf16>, vector<4x256xbf16>, vector<4x256xbf16> -> vector<12x256xbf16>
    %cst_69 = arith.constant dense<0.000000e+00> : vector<8x256xf32>
    %126 = tpu.matmul %5, %125, %cst_69 {dimension_numbers = #tpu.dot_dimension_numbers<[1], [0], [0], [1], [0, 0, 1, 1], [], []>} : vector<8x12xbf16>, vector<12x256xbf16>, vector<8x256xf32> -> vector<8x256xf32>
    %c0_70 = arith.constant 0 : index
    %c16_71 = arith.constant 16 : index
    %127 = vector.load %arg10[%c0_70, %c16_71] : memref<4x288xbf16, #tpu.memory_space<vmem>>, vector<4x256xbf16>
    %128 = vector.extract_strided_slice %127 {offsets = [0, 0], sizes = [4, 255], strides = [1, 1]} : vector<4x256xbf16> to vector<4x255xbf16>
    %129 = tpu.concatenate %115, %128 in 1 : vector<4x1xbf16>, vector<4x255xbf16> -> vector<4x256xbf16>
    %130 = vector.broadcast %19 : vector<1x256xbf16> to vector<4x256xbf16>
    %131 = arith.mulf %129, %130 : vector<4x256xbf16>
    %132 = vector.extract_strided_slice %127 {offsets = [0, 1], sizes = [4, 255], strides = [1, 1]} : vector<4x256xbf16> to vector<4x255xbf16>
    %133 = tpu.concatenate %132, %115 in 1 : vector<4x255xbf16>, vector<4x1xbf16> -> vector<4x256xbf16>
    %134 = vector.broadcast %20 : vector<1x256xbf16> to vector<4x256xbf16>
    %135 = arith.mulf %133, %134 : vector<4x256xbf16>
    %136 = tpu.concatenate %131, %127, %135 in 0 : vector<4x256xbf16>, vector<4x256xbf16>, vector<4x256xbf16> -> vector<12x256xbf16>
    %cst_72 = arith.constant dense<0.000000e+00> : vector<8x256xf32>
    %137 = tpu.matmul %7, %136, %cst_72 {dimension_numbers = #tpu.dot_dimension_numbers<[1], [0], [0], [1], [0, 0, 1, 1], [], []>} : vector<8x12xbf16>, vector<12x256xbf16>, vector<8x256xf32> -> vector<8x256xf32>
    %138 = arith.addf %126, %137 : vector<8x256xf32>
    %c0_73 = arith.constant 0 : index
    %c32_74 = arith.constant 32 : index
    %139 = vector.load %arg10[%c0_73, %c32_74] : memref<4x288xbf16, #tpu.memory_space<vmem>>, vector<4x256xbf16>
    %140 = vector.extract_strided_slice %139 {offsets = [0, 0], sizes = [4, 255], strides = [1, 1]} : vector<4x256xbf16> to vector<4x255xbf16>
    %141 = tpu.concatenate %115, %140 in 1 : vector<4x1xbf16>, vector<4x255xbf16> -> vector<4x256xbf16>
    %142 = vector.broadcast %19 : vector<1x256xbf16> to vector<4x256xbf16>
    %143 = arith.mulf %141, %142 : vector<4x256xbf16>
    %144 = vector.extract_strided_slice %139 {offsets = [0, 1], sizes = [4, 255], strides = [1, 1]} : vector<4x256xbf16> to vector<4x255xbf16>
    %145 = tpu.concatenate %144, %115 in 1 : vector<4x255xbf16>, vector<4x1xbf16> -> vector<4x256xbf16>
    %146 = vector.broadcast %20 : vector<1x256xbf16> to vector<4x256xbf16>
    %147 = arith.mulf %145, %146 : vector<4x256xbf16>
    %148 = tpu.concatenate %143, %139, %147 in 0 : vector<4x256xbf16>, vector<4x256xbf16>, vector<4x256xbf16> -> vector<12x256xbf16>
    %cst_75 = arith.constant dense<0.000000e+00> : vector<8x256xf32>
    %149 = tpu.matmul %9, %148, %cst_75 {dimension_numbers = #tpu.dot_dimension_numbers<[1], [0], [0], [1], [0, 0, 1, 1], [], []>} : vector<8x12xbf16>, vector<12x256xbf16>, vector<8x256xf32> -> vector<8x256xf32>
    %150 = arith.addf %138, %149 : vector<8x256xf32>
    %151 = vector.broadcast %17 : vector<8x1xf32> to vector<8x256xf32>
    %152 = arith.addf %150, %151 : vector<8x256xf32>
    %cst_76 = arith.constant 0.000000e+00 : f32
    %153 = vector.broadcast %cst_76 : f32 to vector<8x256xf32>
    %154 = arith.maximumf %152, %153 : vector<8x256xf32>
    %155 = arith.truncf %154 : vector<8x256xf32> to vector<8x256xbf16>
    %c0_77 = arith.constant 0 : index
    %c16_78 = arith.constant 16 : index
    %156 = vector.load %arg11[%c0_77, %c16_78] : memref<8x288xbf16, #tpu.memory_space<vmem>>, vector<8x256xbf16>
    tpu.vector_store %arg11[%c0_77, %c16_78], %155 {strides = array<i32>} : memref<8x288xbf16, #tpu.memory_space<vmem>>, vector<8x256xbf16>,
    %cst_79 = arith.constant 0.000000e+00 : bf16
    %157 = vector.broadcast %cst_79 : bf16 to vector<8x1xbf16>
    %c0_80 = arith.constant 0 : index
    %c0_81 = arith.constant 0 : index
    %158 = vector.load %arg11[%c0_80, %c0_81] : memref<8x288xbf16, #tpu.memory_space<vmem>>, vector<8x256xbf16>
    %159 = vector.extract_strided_slice %158 {offsets = [0, 0], sizes = [8, 255], strides = [1, 1]} : vector<8x256xbf16> to vector<8x255xbf16>
    %160 = tpu.concatenate %157, %159 in 1 : vector<8x1xbf16>, vector<8x255xbf16> -> vector<8x256xbf16>
    %161 = vector.broadcast %19 : vector<1x256xbf16> to vector<8x256xbf16>
    %162 = arith.mulf %160, %161 : vector<8x256xbf16>
    %163 = vector.extract_strided_slice %158 {offsets = [0, 1], sizes = [8, 255], strides = [1, 1]} : vector<8x256xbf16> to vector<8x255xbf16>
    %164 = tpu.concatenate %163, %157 in 1 : vector<8x255xbf16>, vector<8x1xbf16> -> vector<8x256xbf16>
    %165 = vector.broadcast %20 : vector<1x256xbf16> to vector<8x256xbf16>
    %166 = arith.mulf %164, %165 : vector<8x256xbf16>
    %167 = tpu.concatenate %162, %158, %166 in 0 : vector<8x256xbf16>, vector<8x256xbf16>, vector<8x256xbf16> -> vector<24x256xbf16>
    %cst_82 = arith.constant dense<0.000000e+00> : vector<8x256xf32>
    %168 = tpu.matmul %11, %167, %cst_82 {dimension_numbers = #tpu.dot_dimension_numbers<[1], [0], [0], [1], [0, 0, 1, 1], [], []>} : vector<8x24xbf16>, vector<24x256xbf16>, vector<8x256xf32> -> vector<8x256xf32>
    %c0_83 = arith.constant 0 : index
    %c16_84 = arith.constant 16 : index
    %169 = vector.load %arg11[%c0_83, %c16_84] : memref<8x288xbf16, #tpu.memory_space<vmem>>, vector<8x256xbf16>
    %170 = vector.extract_strided_slice %169 {offsets = [0, 0], sizes = [8, 255], strides = [1, 1]} : vector<8x256xbf16> to vector<8x255xbf16>
    %171 = tpu.concatenate %157, %170 in 1 : vector<8x1xbf16>, vector<8x255xbf16> -> vector<8x256xbf16>
    %172 = vector.broadcast %19 : vector<1x256xbf16> to vector<8x256xbf16>
    %173 = arith.mulf %171, %172 : vector<8x256xbf16>
    %174 = vector.extract_strided_slice %169 {offsets = [0, 1], sizes = [8, 255], strides = [1, 1]} : vector<8x256xbf16> to vector<8x255xbf16>
    %175 = tpu.concatenate %174, %157 in 1 : vector<8x255xbf16>, vector<8x1xbf16> -> vector<8x256xbf16>
    %176 = vector.broadcast %20 : vector<1x256xbf16> to vector<8x256xbf16>
    %177 = arith.mulf %175, %176 : vector<8x256xbf16>
    %178 = tpu.concatenate %173, %169, %177 in 0 : vector<8x256xbf16>, vector<8x256xbf16>, vector<8x256xbf16> -> vector<24x256xbf16>
    %cst_85 = arith.constant dense<0.000000e+00> : vector<8x256xf32>
    %179 = tpu.matmul %13, %178, %cst_85 {dimension_numbers = #tpu.dot_dimension_numbers<[1], [0], [0], [1], [0, 0, 1, 1], [], []>} : vector<8x24xbf16>, vector<24x256xbf16>, vector<8x256xf32> -> vector<8x256xf32>
    %180 = arith.addf %168, %179 : vector<8x256xf32>
    %c0_86 = arith.constant 0 : index
    %c32_87 = arith.constant 32 : index
    %181 = vector.load %arg11[%c0_86, %c32_87] : memref<8x288xbf16, #tpu.memory_space<vmem>>, vector<8x256xbf16>
    %182 = vector.extract_strided_slice %181 {offsets = [0, 0], sizes = [8, 255], strides = [1, 1]} : vector<8x256xbf16> to vector<8x255xbf16>
    %183 = tpu.concatenate %157, %182 in 1 : vector<8x1xbf16>, vector<8x255xbf16> -> vector<8x256xbf16>
    %184 = vector.broadcast %19 : vector<1x256xbf16> to vector<8x256xbf16>
    %185 = arith.mulf %183, %184 : vector<8x256xbf16>
    %186 = vector.extract_strided_slice %181 {offsets = [0, 1], sizes = [8, 255], strides = [1, 1]} : vector<8x256xbf16> to vector<8x255xbf16>
    %187 = tpu.concatenate %186, %157 in 1 : vector<8x255xbf16>, vector<8x1xbf16> -> vector<8x256xbf16>
    %188 = vector.broadcast %20 : vector<1x256xbf16> to vector<8x256xbf16>
    %189 = arith.mulf %187, %188 : vector<8x256xbf16>
    %190 = tpu.concatenate %185, %181, %189 in 0 : vector<8x256xbf16>, vector<8x256xbf16>, vector<8x256xbf16> -> vector<24x256xbf16>
    %cst_88 = arith.constant dense<0.000000e+00> : vector<8x256xf32>
    %191 = tpu.matmul %15, %190, %cst_88 {dimension_numbers = #tpu.dot_dimension_numbers<[1], [0], [0], [1], [0, 0, 1, 1], [], []>} : vector<8x24xbf16>, vector<24x256xbf16>, vector<8x256xf32> -> vector<8x256xf32>
    %192 = arith.addf %180, %191 : vector<8x256xf32>
    %cst_89 = arith.constant dense<0.000000e+00> : vector<8x256xf32>
    %193 = tpu.matmul %16, %113, %cst_89 {dimension_numbers = #tpu.dot_dimension_numbers<[1], [0], [0], [1], [0, 0, 1, 1], [], []>} : vector<8x4xbf16>, vector<4x256xbf16>, vector<8x256xf32> -> vector<8x256xf32>
    %194 = arith.addf %192, %193 : vector<8x256xf32>
    %195 = vector.broadcast %18 : vector<8x1xf32> to vector<8x256xf32>
    %196 = arith.addf %194, %195 : vector<8x256xf32>
    %cst_90 = arith.constant 0.000000e+00 : f32
    %197 = vector.broadcast %cst_90 : f32 to vector<8x256xf32>
    %198 = arith.maximumf %196, %197 : vector<8x256xf32>
    %199 = arith.truncf %198 : vector<8x256xf32> to vector<8x256xbf16>
    %c1_91 = arith.constant 1 : index
    %c0_92 = arith.constant 0 : index
    %c0_93 = arith.constant 0 : index
    %200 = vector.load %arg9[%c1_91, %c0_92, %c0_93] : memref<2x8x256xbf16, #tpu.memory_space<vmem>>, vector<1x8x256xbf16>
    %201 = vector.shape_cast %200 : vector<1x8x256xbf16> to vector<8x256xbf16>
    %202 = vector.shape_cast %199 : vector<8x256xbf16> to vector<1x8x256xbf16>
    tpu.vector_store %arg9[%c1_91, %c0_92, %c0_93], %202 {strides = array<i32>} : memref<2x8x256xbf16, #tpu.memory_space<vmem>>, vector<1x8x256xbf16>,
    return
  }
  func.func @transform_0(%arg0: i32) -> (i32, i32, i32) {
    %c0_i32 = arith.constant 0 : i32
    %c0_i32_0 = arith.constant 0 : i32
    %c0_i32_1 = arith.constant 0 : i32
    return %arg0, %c0_i32, %c0_i32_0 : i32, i32, i32
  }
  func.func @transform_1(%arg0: i32) -> (i32, i32, i32) {
    %c0_i32 = arith.constant 0 : i32
    %c0_i32_0 = arith.constant 0 : i32
    %c0_i32_1 = arith.constant 0 : i32
    %c0_i32_2 = arith.constant 0 : i32
    return %c0_i32, %c0_i32_0, %c0_i32_1 : i32, i32, i32
  }
  func.func @transform_2(%arg0: i32) -> (i32, i32, i32) {
    %c0_i32 = arith.constant 0 : i32
    %c0_i32_0 = arith.constant 0 : i32
    %c0_i32_1 = arith.constant 0 : i32
    %c0_i32_2 = arith.constant 0 : i32
    return %c0_i32, %c0_i32_0, %c0_i32_1 : i32, i32, i32
  }
  func.func @transform_3(%arg0: i32) -> (i32, i32) {
    %c0_i32 = arith.constant 0 : i32
    %c0_i32_0 = arith.constant 0 : i32
    %c0_i32_1 = arith.constant 0 : i32
    return %c0_i32, %c0_i32_0 : i32, i32
  }
  func.func @transform_4(%arg0: i32) -> (i32, i32) {
    %c0_i32 = arith.constant 0 : i32
    %c0_i32_0 = arith.constant 0 : i32
    %c0_i32_1 = arith.constant 0 : i32
    return %c0_i32, %c0_i32_0 : i32, i32
  }
  func.func @transform_5(%arg0: i32) -> (i32, i32) {
    %c0_i32 = arith.constant 0 : i32
    %c0_i32_0 = arith.constant 0 : i32
    %c0_i32_1 = arith.constant 0 : i32
    return %c0_i32, %c0_i32_0 : i32, i32
  }
  func.func @transform_6(%arg0: i32) -> (i32, i32) {
    %c0_i32 = arith.constant 0 : i32
    %c0_i32_0 = arith.constant 0 : i32
    %c0_i32_1 = arith.constant 0 : i32
    return %c0_i32, %c0_i32_0 : i32, i32
  }
  func.func @transform_7(%arg0: i32) -> (i32, i32) {
    %c0_i32 = arith.constant 0 : i32
    %c0_i32_0 = arith.constant 0 : i32
    %c0_i32_1 = arith.constant 0 : i32
    return %c0_i32, %c0_i32_0 : i32, i32
  }
  func.func @transform_8(%arg0: i32) -> (i32, i32, i32) {
    %c0_i32 = arith.constant 0 : i32
    %c0_i32_0 = arith.constant 0 : i32
    %c0_i32_1 = arith.constant 0 : i32
    return %arg0, %c0_i32, %c0_i32_0 : i32, i32, i32
  }
}

</mosaic_0001>

<bundles_post_ra>
// kernel: tpu_custom_call.1
= control target key start
LH: loop header
LB: loop body
LE: loop exit
PB: predicated region body
PF: predicated region fallthrough
CT: control target
= control target key end

     0   :  { %13 = vsyncpa [#allocation5], 0  ;;  %s2962_s0 = inlined_call_operand.vmem [shape: bf16[4,4,256], index: 0, kind: input, shape index: {}]   ;;  %s2963_s1 = inlined_call_operand.hbm [shape: bf16[3,8,12], index: 1, kind: input, shape index: {}]   ;;  %s2964_s2 = inlined_call_operand.hbm [shape: bf16[3,8,24], index: 2, kind: input, shape index: {}]   ;;  %s2965_s3 = inlined_call_operand.vmem [shape: bf16[8,4], index: 3, kind: input, shape index: {}]   ;;  %s2966_s4 = inlined_call_operand.vmem [shape: f32[8,1], index: 4, kind: input, shape index: {}]   ;;  %s2967_s5 = inlined_call_operand.vmem [shape: f32[8,1], index: 5, kind: input, shape index: {}]   ;;  %s2968_s6 = inlined_call_operand.vmem [shape: bf16[1,256], index: 6, kind: input, shape index: {}]   ;;  %s2969_s7 = inlined_call_operand.vmem [shape: bf16[1,256], index: 7, kind: input, shape index: {}]   ;;  %s2970_s8 = inlined_call_operand.hbm [shape: bf16[4,8,256], index: 8, kind: output, shape index: {}]  }
   0x1   :  { %14 = vsyncpa [#allocation8], 0 }
   0x2   :  { %15 = vsyncpa [#allocation6], 0 }
   0x3   :  { %17 = vsyncpa [#allocation6 + $0x1], 0  ;;  %s2228_s27 = smov 0   ;;  %s2230_s28 = smov 0  }
   0x4   :  { %s2232_s29 = smov 0   ;;  %s2234_s30 = smov 0  }
   0x5 LB: > { %s2249_s9 = sadd.s32 4294967295, %s2165_s30   ;;  %s1908_s10 = sadd.s32 4294967294, %s2165_s30   ;;  %s2165_s30 = sphi %s2234_s30, %s2999_s30   ;;  %s2161_s29 = sphi %s2232_s29, %s2998_s29   ;;  %s2157_s28 = sphi %s2230_s28, %s2997_s28   ;;  %s2153_s27 = sphi %s2228_s27, %s2996_s27  }
   0x6   : > { %s2253_s11 = sadd.s32 1, %s2165_s30   ;;  %s203_s12 = sadd.s32 1, %s2161_s29 }
   0x7   : > { %s200_s13 = ssub.s32 %s2165_s30, %s2253_s11  ;;  %p213_p0 = scmp.ne.s32.totalorder %s2161_s29, %s2157_s28 }
   0x8   : > { %p201_p1 = scmp.eq.s32.totalorder %s200_s13, 0  ;;  %p214_p2 = scmp.eq.s32.totalorder %s2249_s9, 1 }
   0x9   : > { %p219_p3 = scmp.ne.s32.totalorder %s2157_s28, %s2153_s27  ;;  %p220_p4 = scmp.eq.s32.totalorder %s1908_s10, 1 }
   0xa   : > { %s2264_s14 = scalar_select %p201_p1, %s2161_s29, %s203_s12  }
   0xb   : > { %p2266_p5 = por %p214_p2, %p213_p0  ;;  %p2270_p6 = por %p220_p4, %p219_p3 }
   0xc   : > { %p1909_p7 = scmp.ge.s32.totalorder %s2165_s30, 1  ;;  %p227_p8 = scmp.lt.s32.totalorder %s2165_s30, 3 }
   0xd   : > { %p1980_p9 = scmp.eq.s32.totalorder %s2249_s9, 0  ;;  %s238_s20 = sshll.u32 %s2963_s1, 4  ;;  %s239_s20 = int_to_ptr.hbm [resolvable:$true] %s238_s20 }
   0xe   : > { %p2277_p10 = pnand %p1909_p7, %p227_p8  ;;  %s2167_s21 = smov [#allocation4]  }
   0xf   : > { %s240_s22 = sshll.u32 %s2167_s21, 4  ;;  %s252_s25 = sshll.u32 %s2964_s2, 4  ;;  %s241_s22 = int_to_ptr.vmem [resolvable:$true] %s240_s22  ;;  %s253_s25 = int_to_ptr.hbm [resolvable:$true] %s252_s25 }
  0x10   : > { %p1969_p11 = pneg %p2277_p10  ;;  %s2168_s26 = smov 64  }
  0x11   : > { %s2169_s10 = smov 4   ;;  %s2170_s12 = smov [#allocation7]  }
  0x12   : > { %p1970_p12 = pnand %p1980_p9, %p1969_p11  ;;  %s254_s13 = sshll.u32 %s2170_s12, 4  ;;  %s255_s13 = int_to_ptr.vmem [resolvable:$true] %s254_s13 }
  0x13   : > { %295 = sbr.rel (%p2277_p10) target bundleno = 1432 (0x598), region = 52 }
  0x14   : > { %1972 = dma.hbm_to_vmem [thread:$0]  (!%p1970_p12), %s239_s20, 192, %s241_s22, [#allocation5], %s2168_s26, %s2168_s26, %s2169_s10  }
  0x15   : > { %1975 = dma.hbm_to_vmem [thread:$0]  (!%p1970_p12), %s253_s25, 192, %s255_s13, [#allocation8], %s2168_s26, %s2168_s26, %s2169_s10  }
  0x18   : > { %2140 = dma.done.wait (%p1980_p9), [#allocation5], 192  }
  0x19   : > { %2142 = vsyncadd (%p1980_p9), [#allocation5], 4294967104 }
  0x1a   : > { %2144 = dma.done.wait (%p1980_p9), [#allocation8], 192  }
  0x1b   : > { %2146 = vsyncadd (%p1980_p9), [#allocation8], 4294967104  ;;  %s1917_s18 = sshll.u32 %s2249_s9, 1  ;;  %vm345_vm0 = vcmask 1041408   ;;  %vm346_vm1 = vcmask 1043458   ;;  %vm348_vm3 = vcmask 259076  }
  0x1c   : > { %p337_p13 = scmp.lt.s32.totalorder %s1917_s18, 3  ;;  %vm347_vm2 = vmor %vm346_vm1, %vm345_vm0  ;;  %v2171_v0 = vmov 0   ;;  %s2172_s22 = smov 16   ;;  %vm377_vm5 = vcmask 1041536   ;;  %vm379_vm7 = vcmask 128004   ;;  %vm374_vm8 = vcmask 130048  }
  0x1d   : > { %vm349_vm4 = vmor %vm348_vm3, %vm347_vm2  ;;  %351 = vst [vmem:[#allocation3] sm:$0xff] %v2171_v0  ;;  %2033 = vset.pattern.permute.xlu2 %v2171_v0  ;;  %2034 = vset.pattern.permute.xlu0 %v2171_v0  ;;  %v2329_v7 = vld [vmem:[%s2968_s6] sm:$0x3]  ;;  %s2173_s25 = smov 1   ;;  %s2174_s12 = smov 127   ;;  %vm393_vm10 = vcmask 7168  }
  0x1e   : > { %s3001_s18 = smov (!%p337_p13, %s1917_s18), 3  ;;  %350 = vst.msk [vmem:[#allocation2] sm:$0x3f] %vm349_vm4, %v2171_v0  ;;  %vm378_vm6 = vmor %vm346_vm1, %vm377_vm5  ;;  %v2341_v12 = vld [vmem:[%s2969_s7] sm:$0x3]  ;;  %s2175_s13 = smov 113  }
  0x1f   : > { %s1956_s17 = sshll.u32 %s3001_s18, 2  ;;  %vm2319_vm9 = vmor %vm379_vm7, %vm378_vm6  ;;  %s2176_s18 = smov 111   ;;  %vm427_vm11 = vcmask 1039360   ;;  %vm469_vm12 = vcmask 1043456   ;;  %vm567_vm13 = vcmask 1045504   ;;  %vm489_vm14 = vcmask 924672  }
  0x20   : > { %s2311_s21 = scalar_lea.vmem %s2962_s0, %s1956_s17  ;;  %s2177_s17 = smov 112   ;;  %vm514_vm15 = vcmask 908288   ;;  %vm2971_vm1 = vcmask 97280   ;;  %vm2973_vm2 = vcmask 916480   ;;  %vm2972_vm3 = vcmask 793600  }
  0x21   : > { %v2314_v1 = vld [vmem:[%s2311_s21] sm:$0xf]  ;;  %s2178_s19 = smov 97   ;;  %s2179_s20 = smov 95   ;;  %v2374_v39 = vld [vmem:[%s2311_s21 + $0x4] sm:$0xf] }
  0x22   : > { %371 = vrot.lane.b32.xlu0 %v2314_v1, %s2172_s22  ;;  %s2180_s23 = smov 96   ;;  %vm671_vm4 = vcmask 777216   ;;  %vm2974_vm5 = vcmask 785408   ;;  %vm352_vm6 = vcmask 257024   ;;  %vm772_vm7 = vcmask 1043584  }
  0x23   : > { %353 = vst.msk [vmem:[#allocation3 + $0x8] sm:$0xf] %vm352_vm6, %v2171_v0  ;;  %vm776_vm6 = vcmask 125952  }
  0x94   : > { %v372_v2 = vpop.permute.xlu0 %371 }
  0x95   : > { %v373_v4 = vrot.slane %v372_v2, 6 }
  0x97   : > { %v375_v5 = vsel %vm374_vm8, %v373_v4, %v372_v2 }
  0x98   : > { %381 = vst.msk [vmem:[#allocation2] sm:$0x3f] %vm2319_vm9, %v375_v5 }
  0x9f   : > { %v382_v6 = vld [vmem:[#allocation2] sm:$0xf] }
  0xa0   : > { %384 = vst [vmem:[#allocation1] ss:$4 sm:$0xff] %v382_v6  ;;  %v474_v17 = vld [vmem:[#allocation2] sm:$0x3f] }
  0xa1   : > { %v631_v29 = vld [vmem:[#allocation2] sm:$0x3f] }
  0xa7   : > { %v385_v8 = vld.sshfl [vmem:[#allocation1] sm:$0xff pattern:$0x73625140]  ;;  %v387_v9 = vld.sshfl [vmem:[#allocation1 + $0x8] sm:$0xff pattern:$0x73625140] }
  0xa8   : > { %402 = vst [vmem:[#allocation1] ss:$9 sm:$0xff] %v2329_v7  ;;  %391 = vrot.lane.b32.xlu2 %v387_v9, %s2173_s25  ;;  %389 = vrot.lane.b32.xlu1 %v385_v8, %s2173_s25 }
  0xaf   : > { %v2334_v10 = vld [vmem:[#allocation1] sm:$0xff]  ;;  %v2336_v11 = vld [vmem:[#allocation1 + $0x9] sm:$0xff] }
  0xb0   : > { %418 = vst [vmem:[#allocation1] ss:$4 sm:$0xff] %v382_v6  ;;  %v405_v45 = vpack.i.b16 %v2334_v10, %v2334_v10  ;;  %v408_v46 = vpack.i.b16 %v2336_v11, %v2336_v11 }
  0xb2   : > { %v407_v50 = vperm.slane %v405_v45, 0  ;;  %v410_v51 = vperm.slane %v408_v46, 0 }
  0xb4   : > { %v2394_v54 = vunpack.c.l.bf16 %v407_v50  ;;  %v2396_v55 = vunpack.c.l.bf16 %v410_v51 }
  0xb7   : > { %v419_v13 = vld.sshfl [vmem:[#allocation1] sm:$0xff pattern:$0x73625140]  ;;  %v421_v14 = vld.sshfl [vmem:[#allocation1 + $0x8] sm:$0xff pattern:$0x73625140] }
  0xb8   : > { %435 = vst [vmem:[#allocation1] ss:$9 sm:$0xff] %v2341_v12  ;;  %425 = vrot.lane.b32.xlu1 %v421_v14, %s2174_s12  ;;  %423 = vrot.lane.b32.xlu0 %v419_v13, %s2174_s12 }
  0xbf   : > { %v2346_v15 = vld [vmem:[#allocation1] sm:$0xff]  ;;  %v2348_v16 = vld [vmem:[#allocation1 + $0x9] sm:$0xff] }
  0xc0   : > { %457 = vst [vmem:[#allocation1 + $0x1] ss:$4 sm:$0xff] %v382_v6  ;;  %v441_v56 = vpack.i.b16 %v2348_v16, %v2348_v16  ;;  %v438_v57 = vpack.i.b16 %v2346_v15, %v2346_v15 }
  0xc2   : > { %v443_v60 = vperm.slane %v441_v56, 0  ;;  %v440_v61 = vperm.slane %v438_v57, 0 }
  0xc4   : > { %v2406_v6 = vunpack.c.l.bf16 %v443_v60  ;;  %v2408_v8 = vunpack.c.l.bf16 %v440_v61 }
  0xc7   : > { %v2350_v18 = vld.sshfl [vmem:[#allocation1] sm:$0xff pattern:$0x73625140]  ;;  %v2352_v19 = vld.sshfl [vmem:[#allocation1 + $0x8] sm:$0xff pattern:$0x73625140] }
  0xc8   : > { %476 = vst [vmem:[#allocation1] ss:$4 sm:$0xff] %v474_v17 }
  0xcf   : > { %v477_v20 = vld.sshfl [vmem:[#allocation1] sm:$0xff pattern:$0x73625140]  ;;  %v479_v21 = vld.sshfl [vmem:[#allocation1 + $0x8] sm:$0xff pattern:$0x73625140] }
  0xd0   : > { %v481_v22 = vld.sshfl [vmem:[#allocation1 + $0x10] sm:$0xff pattern:$0x73625140]  ;;  %485 = vrot.lane.b32.xlu1 %v479_v21, %s2175_s13  ;;  %483 = vrot.lane.b32.xlu0 %v477_v20, %s2175_s13 }
  0xd1   : > { %501 = vst [vmem:[#allocation1] ss:$4 sm:$0xff] %v474_v17 }
  0xd8   : > { %v502_v23 = vld.sshfl [vmem:[#allocation1] sm:$0xff pattern:$0x73625140]  ;;  %v504_v24 = vld.sshfl [vmem:[#allocation1 + $0x8] sm:$0xff pattern:$0x73625140]  ;;  %487 = vrot.lane.b32.xlu1 %v481_v22, %s2175_s13 }
  0xd9   : > { %v506_v25 = vld.sshfl [vmem:[#allocation1 + $0x10] sm:$0xff pattern:$0x73625140]  ;;  %510 = vrot.lane.b32.xlu2 %v504_v24, %s2176_s18  ;;  %508 = vrot.lane.b32.xlu0 %v502_v23, %s2176_s18 }
  0xda   : > { %532 = vst [vmem:[#allocation1 + $0x1] ss:$4 sm:$0xff] %v474_v17 }
  0xe1   : > { %v533_v26 = vld.sshfl [vmem:[#allocation1] sm:$0xff pattern:$0x73625140]  ;;  %v535_v27 = vld.sshfl [vmem:[#allocation1 + $0x8] sm:$0xff pattern:$0x73625140]  ;;  %512 = vrot.lane.b32.xlu2 %v506_v25, %s2176_s18 }
  0xe2   : > { %v537_v28 = vld.sshfl [vmem:[#allocation1 + $0x10] sm:$0xff pattern:$0x73625140]  ;;  %541 = vrot.lane.b32.xlu0 %v535_v27, %s2177_s17 }
  0xe3   : > { %633 = vst [vmem:[#allocation1] ss:$4 sm:$0xff] %v631_v29  ;;  %543 = vrot.lane.b32.xlu1 %v537_v28, %s2177_s17 }
  0xe9   : > { %539 = vrot.lane.b32.xlu2 %v533_v26, %s2177_s17 }
  0xea   : > { %v634_v30 = vld.sshfl [vmem:[#allocation1] sm:$0xff pattern:$0x73625140]  ;;  %v636_v31 = vld.sshfl [vmem:[#allocation1 + $0x8] sm:$0xff pattern:$0x73625140] }
  0xeb   : > { %v638_v32 = vld.sshfl [vmem:[#allocation1 + $0x10] sm:$0xff pattern:$0x73625140]  ;;  %642 = vrot.lane.b32.xlu0 %v636_v31, %s2178_s19 }
  0xec   : > { %658 = vst [vmem:[#allocation1] ss:$4 sm:$0xff] %v631_v29  ;;  %644 = vrot.lane.b32.xlu1 %v638_v32, %s2178_s19 }
  0xf1   : > { %640 = vrot.lane.b32.xlu2 %v634_v30, %s2178_s19 }
  0xf3   : > { %v659_v33 = vld.sshfl [vmem:[#allocation1] sm:$0xff pattern:$0x73625140]  ;;  %v661_v34 = vld.sshfl [vmem:[#allocation1 + $0x8] sm:$0xff pattern:$0x73625140] }
  0xf4   : > { %v663_v35 = vld.sshfl [vmem:[#allocation1 + $0x10] sm:$0xff pattern:$0x73625140]  ;;  %665 = vrot.lane.b32.xlu1 %v659_v33, %s2179_s20 }
  0xf5   : > { %689 = vst [vmem:[#allocation1 + $0x1] ss:$4 sm:$0xff] %v631_v29  ;;  %669 = vrot.lane.b32.xlu0 %v663_v35, %s2179_s20 }
  0xf9   : > { %667 = vrot.lane.b32.xlu2 %v661_v34, %s2179_s20 }
  0xfc   : > { %v690_v36 = vld.sshfl [vmem:[#allocation1] sm:$0xff pattern:$0x73625140]  ;;  %v692_v37 = vld.sshfl [vmem:[#allocation1 + $0x8] sm:$0xff pattern:$0x73625140] }
  0xfd   : > { %v694_v38 = vld.sshfl [vmem:[#allocation1 + $0x10] sm:$0xff pattern:$0x73625140]  ;;  %698 = vrot.lane.b32.xlu0 %v692_v37, %s2180_s23 }
  0xfe   : > { %793 = vst [vmem:[#allocation1] ss:$9 sm:$0xff] %v2329_v7  ;;  %700 = vrot.lane.b32.xlu1 %v694_v38, %s2180_s23 }
 0x101   : > { %696 = vrot.lane.b32.xlu2 %v690_v36, %s2180_s23 }
 0x102   : > { %v392_v47 = vpop.permute.xlu2 %391 }
 0x105   : > { %v2376_v40 = vld [vmem:[#allocation1] sm:$0xff]  ;;  %v2378_v41 = vld [vmem:[#allocation1 + $0x9] sm:$0xff]  ;;  %1144 = vrot.lane.b32.xlu0 %v2374_v39, %s2172_s22 }
 0x106   : > { %818 = vst [vmem:[#allocation1] ss:$9 sm:$0xff] %v2341_v12 }
 0x10d   : > { %v2383_v42 = vld [vmem:[#allocation1] sm:$0xff]  ;;  %v2385_v43 = vld [vmem:[#allocation1 + $0x9] sm:$0xff] }
 0x10e   : > { %1091 = vst [vmem:[#allocation1] ss:$4 sm:$0xff] %v2314_v1 }
 0x11a   : > { %v390_v44 = vpop.permute.xlu1 %389 }
 0x11b   : > { %v394_v48 = vsel %vm393_vm10, %v390_v44, %v392_v47  ;;  %v399_v49 = vsel %vm393_vm10, 0, %v390_v44 }
 0x11c   : > { %v411_v52 = vunpack.c.l.bf16 %v399_v49  ;;  %v412_v53 = vunpack.c.l.bf16 %v394_v48 }
 0x11e   : > { %v415_v58 = vmul.f32 %v2394_v54, %v411_v52  ;;  %v416_v59 = vmul.f32 %v2396_v55, %v412_v53 }
 0x120   : > { %v417_v62 = vpack.c.bf16 %v416_v59, %v415_v58 }
 0x122   : > { %v452_v9 = vunpack.c.l.b16 %v417_v62  ;;  %v453_v10 = vunpack.c.h.b16 %v417_v62 }
 0x124   : > { %v454_v14 = vpack.c.b16 %v452_v9, %v452_v9  ;;  %v455_v15 = vpack.c.b16 %v453_v10, %v453_v10 }
 0x126   : > { %v466_v22 = vsel %vm345_vm0, %v454_v14, %v2350_v18  ;;  %v468_v23 = vsel %vm345_vm0, %v455_v15, %v2352_v19  ;;  %v2420_v18 = vld [vmem:[#allocation4] sm:$0xf]  ;;  %v2444_v15 = vld [vmem:[#allocation4 + $0x4] sm:$0xf] }
 0x12a   : > { %v426_v63 = vpop.permute.xlu1 %425  ;;  %v424_v1 = vpop.permute.xlu0 %423 }
 0x12b   : > { %v432_v2 = vsel %vm427_vm11, %v426_v63, 0  ;;  %v428_v4 = vsel %vm427_vm11, %v424_v1, %v426_v63 }
 0x12c   : > { %v445_v5 = vunpack.c.l.bf16 %v432_v2  ;;  %v444_v7 = vunpack.c.l.bf16 %v428_v4 }
 0x12e   : > { %v449_v11 = vmul.f32 %v2406_v6, %v445_v5  ;;  %v448_v12 = vmul.f32 %v2408_v8, %v444_v7 }
 0x130   : > { %v450_v13 = vpack.c.bf16 %v449_v11, %v448_v12 }
 0x132   : > { %v461_v16 = vunpack.c.l.b16 %v450_v13  ;;  %v462_v17 = vunpack.c.h.b16 %v450_v13 }
 0x133   : > { %v511_v26 = vpop.permute.xlu2 %510 }
 0x134   : > { %v463_v20 = vpack.c.b16 %v461_v16, %v461_v16  ;;  %v464_v21 = vpack.c.b16 %v462_v17, %v462_v17 }
 0x136   : > { %v471_v24 = vsel %vm469_vm12, %v466_v22, %v463_v20  ;;  %v473_v25 = vsel %vm469_vm12, %v468_v23, %v464_v21 }
 0x137   : > { %v601_v27 = vsel %vm567_vm13, %v471_v24, 0  ;;  %v603_v28 = vsel %vm567_vm13, %v473_v25, 0 }
 0x138   : > { %612 = vmatpush.bf16.msra.mxu2 %v601_v27  ;;  %625 = vmatpush.bf16.msra.mxu3 %v603_v28 }
 0x13b   : > { %v513_v29 = vpop.permute.xlu2 %512  ;;  %1922 = vmatmul.msk.bf16.vlgmr.msra.gmra.mxu2 %vm2971_vm1, %v2420_v18  ;;  %1923 = vmatmul.msk.bf16.vlgmr.msra.gmra.mxu3 %vm2971_vm1, %v2420_v18 }
 0x13c   : > { %v516_v32 = vsel %vm514_vm15, %v511_v26, %v513_v29 }
 0x13d   : > { %v519_v34 = vsel %vm427_vm11, %v516_v32, 0 }
 0x13e   : > { %v522_v37 = vunpack.c.l.bf16 %v519_v34 }
 0x140   : > { %v524_v50 = vmul.f32 %v522_v37, %v2406_v6 }
 0x142   : > { %v486_v30 = vpop.permute.xlu1 %485  ;;  %v484_v31 = vpop.permute.xlu0 %483 }
 0x143   : > { %v490_v19 = vsel %vm489_vm14, %v484_v31, %v486_v30  ;;  %v540_v53 = vpop.permute.xlu2 %539 }
 0x144   : > { %v494_v33 = vsel %vm393_vm10, 0, %v490_v19 }
 0x145   : > { %v496_v35 = vunpack.c.l.bf16 %v494_v33 }
 0x147   : > { %v498_v48 = vmul.f32 %v496_v35, %v2394_v54 }
 0x14a   : > { %v488_v36 = vpop.permute.xlu1 %487 }
 0x14b   : > { %v491_v38 = vsel %vm489_vm14, %v486_v30, %v488_v36  ;;  %v509_v44 = vpop.permute.xlu0 %508  ;;  %v641_v16 = vpop.permute.xlu2 %640 }
 0x14c   : > { %v497_v45 = vunpack.c.l.bf16 %v491_v38  ;;  %v515_v46 = vsel %vm514_vm15, %v509_v44, %v511_v26 }
 0x14d   : > { %v521_v47 = vunpack.c.l.bf16 %v515_v46 }
 0x14e   : > { %v499_v49 = vmul.f32 %v497_v45, %v2396_v55 }
 0x14f   : > { %v523_v51 = vmul.f32 %v521_v47, %v2408_v8 }
 0x150   : > { %v500_v52 = vpack.c.bf16 %v499_v49, %v498_v48 }
 0x151   : > { %v525_v56 = vpack.c.bf16 %v524_v50, %v523_v51 }
 0x152   : > { %v527_v57 = vunpack.c.l.b16 %v500_v52  ;;  %v528_v58 = vunpack.c.h.b16 %v500_v52 }
 0x153   : > { %v549_v59 = vunpack.c.l.b16 %v525_v56  ;;  %v550_v60 = vunpack.c.h.b16 %v525_v56  ;;  %v668_v26 = vpop.permute.xlu2 %667 }
 0x154   : > { %v542_v61 = vpop.permute.xlu0 %541  ;;  %v529_v62 = vpack.c.b16 %v527_v57, %v527_v57  ;;  %v530_v63 = vpack.c.b16 %v528_v58, %v528_v58 }
 0x155   : > { %v544_v1 = vpop.permute.xlu1 %543  ;;  %v546_v2 = vsel %vm2973_vm2, %v540_v53, %v542_v61  ;;  %v551_v4 = vpack.c.b16 %v549_v59, %v549_v59  ;;  %v552_v5 = vpack.c.b16 %v550_v60, %v550_v60 }
 0x156   : > { %v547_v7 = vsel %vm2973_vm2, %v542_v61, %v544_v1  ;;  %v555_v9 = vsel %vm345_vm0, %v529_v62, %v546_v2  ;;  %v2468_v2 = vld [vmem:[#allocation4 + $0x8] sm:$0xf] }
 0x157   : > { %v560_v10 = vsel %vm469_vm12, %v555_v9, %v551_v4  ;;  %v558_v11 = vsel %vm345_vm0, %v530_v63, %v547_v7  ;;  %v365_v9 = vld [vmem:[%s2966_s4] sm:$0xff] }
 0x158   : > { %v568_v12 = vsel %vm567_vm13, %v560_v10, 0  ;;  %v562_v13 = vsel %vm469_vm12, %v558_v11, %v552_v5  ;;  %757 = vperm.xlu2 %2033, %v365_v9   ;;  %v2480_v10 = vld.sshfl [vmem:[#allocation1] sm:$0xff pattern:$0x73625140] }
 0x159   : > { %579 = vmatpush.bf16.msra.mxu0 %v568_v12  ;;  %v570_v14 = vsel %vm567_vm13, %v562_v13, 0  ;;  %v2482_v11 = vld.sshfl [vmem:[#allocation1 + $0x8] sm:$0xff pattern:$0x73625140] }
 0x15a   : > { %592 = vmatpush.bf16.msra.mxu1 %v570_v14 }
 0x15b   : > { %v697_v46 = vpop.permute.xlu2 %696 }
 0x15c   : > { %1920 = vmatmul.msk.bf16.vlgmr.msra.gmra.mxu0 %vm2971_vm1, %v2444_v15 }
 0x15d   : > { %v643_v17 = vpop.permute.xlu0 %642  ;;  %1921 = vmatmul.msk.bf16.vlgmr.msra.gmra.mxu1 %vm2971_vm1, %v2444_v15 }
 0x15e   : > { %v645_v20 = vpop.permute.xlu1 %644  ;;  %v647_v21 = vsel %vm2972_vm3, %v641_v16, %v643_v17 }
 0x15f   : > { %v648_v22 = vsel %vm2972_vm3, %v643_v17, %v645_v20  ;;  %v651_v23 = vsel %vm393_vm10, 0, %v647_v21 }
 0x160   : > { %v653_v24 = vunpack.c.l.bf16 %v651_v23  ;;  %v654_v25 = vunpack.c.l.bf16 %v648_v22 }
 0x162   : > { %v655_v27 = vmul.f32 %v653_v24, %v2394_v54  ;;  %v656_v28 = vmul.f32 %v654_v25, %v2396_v55 }
 0x164   : > { %v657_v33 = vpack.c.bf16 %v656_v28, %v655_v27 }
 0x166   : > { %v666_v29 = vpop.permute.xlu1 %665  ;;  %v684_v38 = vunpack.c.l.b16 %v657_v33  ;;  %v685_v44 = vunpack.c.h.b16 %v657_v33 }
 0x167   : > { %v670_v30 = vpop.permute.xlu0 %669  ;;  %v672_v31 = vsel %vm671_vm4, %v666_v29, %v668_v26 }
 0x168   : > { %v673_v19 = vsel %vm671_vm4, %v668_v26, %v670_v30  ;;  %v678_v32 = vunpack.c.l.bf16 %v672_v31  ;;  %v686_v53 = vpack.c.b16 %v684_v38, %v684_v38  ;;  %v687_v56 = vpack.c.b16 %v685_v44, %v685_v44 }
 0x169   : > { %v676_v34 = vsel %vm427_vm11, %v673_v19, 0 }
 0x16a   : > { %v679_v35 = vunpack.c.l.bf16 %v676_v34  ;;  %v680_v36 = vmul.f32 %v678_v32, %v2408_v8 }
 0x16c   : > { %v681_v37 = vmul.f32 %v679_v35, %v2406_v6 }
 0x16e   : > { %v682_v45 = vpack.c.bf16 %v681_v37, %v680_v36 }
 0x16f   : > { %v699_v47 = vpop.permute.xlu0 %698 }
 0x170   : > { %v701_v48 = vpop.permute.xlu1 %700  ;;  %v703_v49 = vsel %vm2974_vm5, %v697_v46, %v699_v47  ;;  %v706_v50 = vunpack.c.l.b16 %v682_v45  ;;  %v707_v51 = vunpack.c.h.b16 %v682_v45 }
 0x171   : > { %v704_v52 = vsel %vm2974_vm5, %v699_v47, %v701_v48  ;;  %v712_v59 = vsel %vm345_vm0, %v686_v53, %v703_v49 }
 0x172   : > { %v708_v57 = vpack.c.b16 %v706_v50, %v706_v50  ;;  %v709_v58 = vpack.c.b16 %v707_v51, %v707_v51  ;;  %v715_v60 = vsel %vm345_vm0, %v687_v56, %v704_v52 }
 0x174   : > { %v717_v61 = vsel %vm469_vm12, %v712_v59, %v708_v57  ;;  %v719_v62 = vsel %vm469_vm12, %v715_v60, %v709_v58 }
 0x175   : > { %v723_v63 = vsel %vm567_vm13, %v717_v61, 0  ;;  %v725_v1 = vsel %vm567_vm13, %v719_v62, 0 }
 0x176   : > { %734 = vmatpush.bf16.msrb.mxu0 %v723_v63  ;;  %747 = vmatpush.bf16.msrb.mxu1 %v725_v1 }
 0x177   : > { %v1145_v4 = vpop.permute.xlu0 %1144 }
 0x178   : > { %v1146_v5 = vrot.slane %v1145_v4, 6 }
 0x179   : > { %1924 = vmatmul.msk.bf16.vlgmr.msrb.gmra.mxu0 %vm2971_vm1, %v2468_v2  ;;  %1925 = vmatmul.msk.bf16.vlgmr.msrb.gmra.mxu1 %vm2971_vm1, %v2468_v2 }
 0x17a   : > { %v1147_v7 = vsel %vm374_vm8, %v1146_v5, %v1145_v4 }
 0x17b   : > { %1149 = vst.msk [vmem:[#allocation2] sm:$0x3f] %vm2319_vm9, %v1147_v7  ;;  %vm773_vm9 = vcmask 1047556  }
 0x17c   : > { %vm2531_vm1 = vmor %vm773_vm9, %vm772_vm7  ;;  %vm922_vm7 = vcmask 195584   ;;  %vm2975_vm9 = vcmask 31744  }
 0x182   : > { %v1150_v12 = vld [vmem:[#allocation2] sm:$0xf] }
 0x183   : > { %1152 = vst [vmem:[#allocation1] ss:$4 sm:$0xff] %v1150_v12  ;;  %v1212_v17 = vld [vmem:[#allocation2] sm:$0x3f] }
 0x184   : > { %v1358_v28 = vld [vmem:[#allocation2] sm:$0x3f] }
 0x18a   : > { %v2484_v13 = vld.sshfl [vmem:[#allocation1] sm:$0xff pattern:$0x73625140]  ;;  %v2486_v14 = vld.sshfl [vmem:[#allocation1 + $0x8] sm:$0xff pattern:$0x73625140] }
 0x18b   : > { %1171 = vst [vmem:[#allocation1] ss:$4 sm:$0xff] %v1150_v12 }
 0x192   : > { %v2488_v16 = vld.sshfl [vmem:[#allocation1] sm:$0xff pattern:$0x73625140]  ;;  %v2490_v3 = vld.sshfl [vmem:[#allocation1 + $0x8] sm:$0xff pattern:$0x73625140] }
 0x193   : > { %1196 = vst [vmem:[#allocation1 + $0x1] ss:$4 sm:$0xff] %v1150_v12 }
 0x19a   : > { %v2492_v20 = vld.sshfl [vmem:[#allocation1] sm:$0xff pattern:$0x73625140]  ;;  %v2494_v21 = vld.sshfl [vmem:[#allocation1 + $0x8] sm:$0xff pattern:$0x73625140] }
 0x19b   : > { %1214 = vst [vmem:[#allocation1] ss:$4 sm:$0xff] %v1212_v17 }
 0x1a2   : > { %v1215_v22 = vld.sshfl [vmem:[#allocation1] sm:$0xff pattern:$0x73625140]  ;;  %v1217_v23 = vld.sshfl [vmem:[#allocation1 + $0x8] sm:$0xff pattern:$0x73625140] }
 0x1a3   : > { %v1219_v24 = vld.sshfl [vmem:[#allocation1 + $0x10] sm:$0xff pattern:$0x73625140]  ;;  %1221 = vrot.lane.b32.xlu0 %v1215_v22, %s2175_s13  ;;  %v366_v22 = vld [vmem:[%s2967_s5] sm:$0xff] }
 0x1a4   : > { %1238 = vst [vmem:[#allocation1] ss:$4 sm:$0xff] %v1212_v17  ;;  %1225 = vrot.lane.b32.xlu2 %v1219_v24, %s2175_s13 }
 0x1ab   : > { %v1239_v25 = vld.sshfl [vmem:[#allocation1] sm:$0xff pattern:$0x73625140]  ;;  %v1241_v26 = vld.sshfl [vmem:[#allocation1 + $0x8] sm:$0xff pattern:$0x73625140] }
 0x1ac   : > { %v1243_v27 = vld.sshfl [vmem:[#allocation1 + $0x10] sm:$0xff pattern:$0x73625140]  ;;  %1247 = vrot.lane.b32.xlu0 %v1241_v26, %s2176_s18  ;;  %1245 = vrot.lane.b32.xlu2 %v1239_v25, %s2176_s18 }
 0x1ad   : > { %1268 = vst [vmem:[#allocation1 + $0x1] ss:$4 sm:$0xff] %v1212_v17 }
 0x1b2   : > { %v2503_v46 = vpop.permute.xlu2 %757 }
 0x1b4   : > { %v1269_v29 = vld.sshfl [vmem:[#allocation1] sm:$0xff pattern:$0x73625140]  ;;  %v1271_v30 = vld.sshfl [vmem:[#allocation1 + $0x8] sm:$0xff pattern:$0x73625140] }
 0x1b5   : > { %v2500_v31 = vld.sshfl [vmem:[#allocation1 + $0x10] sm:$0xff pattern:$0x73625140]  ;;  %1275 = vrot.lane.b32.xlu0 %v1269_v29, %s2177_s17 }
 0x1b6   : > { %1360 = vst [vmem:[#allocation1] ss:$4 sm:$0xff] %v1358_v28 }
 0x1bd   : > { %v2511_v60 = vld.sshfl [vmem:[#allocation1 + $0x10] sm:$0xff pattern:$0x73625140]  ;;  %v2513_v61 = vld.sshfl [vmem:[#allocation1] sm:$0xff pattern:$0x73625140] }
 0x1be   : > { %v614_v19 = vpop.f32.mrf.mxu2  ;;  %v627_v32 = vpop.f32.mrf.mxu3  ;;  %v2515_v62 = vld.sshfl [vmem:[#allocation1 + $0x8] sm:$0xff pattern:$0x73625140] }
 0x1bf   : > { %1384 = vst [vmem:[#allocation1] ss:$4 sm:$0xff] %v1358_v28 }
 0x1c6   : > { %v616_v33 = vpop.f32.mrf.mxu2  ;;  %v629_v34 = vpop.f32.mrf.mxu3  ;;  %v2518_v63 = vld.sshfl [vmem:[#allocation1 + $0x8] sm:$0xff pattern:$0x73625140]  ;;  %v2520_v1 = vld.sshfl [vmem:[#allocation1 + $0x10] sm:$0xff pattern:$0x73625140] }
 0x1c7   : > { %v2522_v4 = vld.sshfl [vmem:[#allocation1] sm:$0xff pattern:$0x73625140] }
 0x1c8   : > { %1414 = vst [vmem:[#allocation1 + $0x1] ss:$4 sm:$0xff] %v1358_v28 }
 0x1cf   : > { %v2524_v0 = vld.sshfl [vmem:[#allocation1] sm:$0xff pattern:$0x73625140]  ;;  %v2526_v5 = vld.sshfl [vmem:[#allocation1 + $0x10] sm:$0xff pattern:$0x73625140] }
 0x1d0   : > { %v2528_v7 = vld.sshfl [vmem:[#allocation1 + $0x8] sm:$0xff pattern:$0x73625140] }
 0x1d1   : > { %1765 = vst [vmem:[#allocation1] ss:$4 sm:$0xff] %v2374_v39 }
 0x1d9   : > { %v581_v35 = vpop.f32.mrf.mxu0 }
 0x1da   : > { %v594_v36 = vpop.f32.mrf.mxu1  ;;  %v615_v44 = vadd.f32 %v614_v19, %v581_v35 }
 0x1db   : > { %v628_v45 = vadd.f32 %v627_v32, %v594_v36 }
 0x1e1   : > { %v583_v37 = vpop.f32.mrf.mxu0 }
 0x1e2   : > { %v596_v38 = vpop.f32.mrf.mxu1 }
 0x1f6   : > { %v736_v47 = vpop.f32.mrf.mxu0  ;;  %v749_v48 = vpop.f32.mrf.mxu1 }
 0x1f7   : > { %v753_v49 = vadd.f32 %v736_v47, %v615_v44  ;;  %v754_v50 = vadd.f32 %v749_v48, %v628_v45 }
 0x1f9   : > { %v760_v51 = vadd.f32 %v2503_v46, %v753_v49  ;;  %v761_v52 = vadd.f32 %v2503_v46, %v754_v50 }
 0x1fb   : > { %v762_v53 = vmax.f32 %v760_v51, 0.0  ;;  %v763_v56 = vmax.f32 %v761_v52, 0.0 }
 0x1fd   : > { %v764_v57 = vpack.c.bf16 %v763_v56, %v762_v53 }
 0x1fe   : > { %v738_v58 = vpop.f32.mrf.mxu0  ;;  %v751_v59 = vpop.f32.mrf.mxu1 }
 0x1ff   : > { %766 = vrot.lane.b32.xlu1 %v764_v57, %s2172_s22  ;;  %v1226_v12 = vpop.permute.xlu2 %1225 }
 0x207   : > { %1223 = vrot.lane.b32.xlu1 %v1217_v23, %s2175_s13  ;;  %v1246_v19 = vpop.permute.xlu2 %1245 }
 0x20f   : > { %1249 = vrot.lane.b32.xlu1 %v1243_v27, %s2176_s18 }
 0x215   : > { %v1222_v17 = vpop.permute.xlu0 %1221 }
 0x217   : > { %1277 = vrot.lane.b32.xlu1 %v1271_v30, %s2177_s17 }
 0x21e   : > { %v1248_v30 = vpop.permute.xlu0 %1247 }
 0x21f   : > { %v1251_v35 = vsel %vm514_vm15, %v1246_v19, %v1248_v30 }
 0x220   : > { %v1257_v45 = vunpack.c.l.bf16 %v1251_v35 }
 0x222   : > { %v1259_v52 = vmul.f32 %v1257_v45, %v2408_v8 }
 0x227   : > { %v1276_v58 = vpop.permute.xlu0 %1275 }
 0x271   : > { %v767_v9 = vpop.permute.xlu1 %766 }
 0x272   : > { %v768_v23 = vrot.slane %v767_v9, 4 }
 0x274   : > { %v769_v24 = vsel %vm374_vm8, %v768_v23, %v767_v9  ;;  %777 = vst.msk [vmem:[#allocation3 + $0x8] sm:$0xf] %vm776_vm6, %v768_v23 }
 0x275   : > { %775 = vst.msk [vmem:[#allocation3] sm:$0xff] %vm2531_vm1, %v769_v24 }
 0x279   : > { %v1224_v25 = vpop.permute.xlu1 %1223 }
 0x27a   : > { %v1227_v39 = vsel %vm489_vm14, %v1222_v17, %v1224_v25  ;;  %v1228_v26 = vsel %vm489_vm14, %v1224_v25, %v1226_v12 }
 0x27b   : > { %v1231_v27 = vsel %vm393_vm10, 0, %v1227_v39  ;;  %v1234_v28 = vunpack.c.l.bf16 %v1228_v26  ;;  %v853_v29 = vld [vmem:[#allocation3 + $0x8] sm:$0xf] }
 0x27c   : > { %v1233_v32 = vunpack.c.l.bf16 %v1231_v27  ;;  %v858_v33 = vunpack.c.l.b16 %v853_v29  ;;  %v852_v38 = vld [vmem:[#allocation3] sm:$0xff] }
 0x27d   : > { %v1236_v37 = vmul.f32 %v1234_v28, %v2396_v55  ;;  %v857_v48 = vunpack.c.h.b16 %v852_v38  ;;  %v856_v23 = vunpack.c.l.b16 %v852_v38 }
 0x27e   : > { %v861_v34 = vpack.c.b16 %v858_v33, %v858_v33  ;;  %v1235_v36 = vmul.f32 %v1233_v32, %v2394_v54 }
 0x27f   : > { %v2554_v56 = vpack.c.b16 %v857_v48, %v857_v48  ;;  %v2569_v26 = vpack.c.b16 %v856_v23, %v856_v23 }
 0x280   : > { %1036 = vrot.lane.b32.xlu2 %v861_v34, %s2180_s23  ;;  %866 = vrot.lane.b32.xlu1 %v861_v34, %s2175_s13  ;;  %v2549_v49 = vpack.c.bf16 %v1236_v37, %v1235_v36 }
 0x281   : > { %883 = vrot.lane.b32.xlu0 %v861_v34, %s2176_s18  ;;  %v1250_v44 = vpop.permute.xlu1 %1249 }
 0x282   : > { %v1252_v47 = vsel %vm514_vm15, %v1248_v30, %v1250_v44  ;;  %v1263_v57 = vunpack.c.l.b16 %v2549_v49  ;;  %v796_v44 = vpack.i.b16 %v2376_v40, %v2376_v40 }
 0x283   : > { %v1255_v50 = vsel %vm427_vm11, %v1252_v47, 0 }
 0x284   : > { %v1258_v51 = vunpack.c.l.bf16 %v1255_v50  ;;  %v1265_v24 = vpack.c.b16 %v1263_v57, %v1263_v57 }
 0x286   : > { %v1260_v53 = vmul.f32 %v1258_v51, %v2406_v6 }
 0x288   : > { %v2557_v59 = vpack.c.bf16 %v1260_v53, %v1259_v52  ;;  %905 = vrot.lane.b32.xlu1 %v861_v34, %s2177_s17  ;;  %881 = vrot.lane.b32.xlu2 %v2554_v56, %s2176_s18 }
 0x289   : > { %1014 = vrot.lane.b32.xlu0 %v861_v34, %s2179_s20  ;;  %v2563_v9 = vpop.permute.xlu1 %1277 }
 0x28a   : > { %v1284_v12 = vunpack.c.l.b16 %v2557_v59  ;;  %v1281_v17 = vsel %vm2973_vm2, %v1276_v58, %v2563_v9 }
 0x28b   : > { %v1290_v39 = vsel %vm345_vm0, %v1265_v24, %v1281_v17 }
 0x28c   : > { %v1286_v25 = vpack.c.b16 %v1284_v12, %v1284_v12 }
 0x28e   : > { %v2572_v27 = vsel %vm469_vm12, %v1290_v39, %v1286_v25 }
 0x290   : > { %862 = vrot.lane.b32.xlu2 %v2569_v26, %s2175_s13  ;;  %879 = vrot.lane.b32.xlu1 %v2569_v26, %s2176_s18 }
 0x291   : > { %997 = vrot.lane.b32.xlu0 %v861_v34, %s2178_s19 }
 0x298   : > { %901 = vrot.lane.b32.xlu2 %v2569_v26, %s2177_s17  ;;  %1010 = vrot.lane.b32.xlu1 %v2569_v26, %s2179_s20 }
 0x299   : > { %864 = vrot.lane.b32.xlu0 %v2554_v56, %s2175_s13 }
 0x2a0   : > { %1012 = vrot.lane.b32.xlu2 %v2554_v56, %s2179_s20  ;;  %809 = vrot.lane.b32.xlu1 %v2569_v26, %s2174_s12 }
 0x2a1   : > { %903 = vrot.lane.b32.xlu0 %v2554_v56, %s2177_s17 }
 0x2a8   : > { %993 = vrot.lane.b32.xlu2 %v2569_v26, %s2178_s19  ;;  %784 = vrot.lane.b32.xlu1 %v2569_v26, %s2173_s25 }
 0x2a9   : > { %995 = vrot.lane.b32.xlu0 %v2554_v56, %s2178_s19 }
 0x2b0   : > { %811 = vrot.lane.b32.xlu2 %v2554_v56, %s2174_s12  ;;  %1034 = vrot.lane.b32.xlu1 %v2554_v56, %s2180_s23 }
 0x2b1   : > { %1367 = vrot.lane.b32.xlu0 %v2513_v61, %s2178_s19 }
 0x2b8   : > { %786 = vrot.lane.b32.xlu2 %v2554_v56, %s2173_s25  ;;  %1369 = vrot.lane.b32.xlu1 %v2515_v62, %s2178_s19 }
 0x2b9   : > { %1032 = vrot.lane.b32.xlu0 %v2569_v26, %s2180_s23 }
 0x2c0   : > { %1279 = vrot.lane.b32.xlu2 %v2500_v31, %s2177_s17  ;;  %1395 = vrot.lane.b32.xlu1 %v2520_v1, %s2179_s20 }
 0x2c1   : > { %1393 = vrot.lane.b32.xlu0 %v2518_v63, %s2179_s20 }
 0x2c8   : > { %1371 = vrot.lane.b32.xlu2 %v2511_v60, %s2178_s19  ;;  %1159 = vrot.lane.b32.xlu1 %v2486_v14, %s2173_s25 }
 0x2c9   : > { %1157 = vrot.lane.b32.xlu0 %v2484_v13, %s2173_s25 }
 0x2d0   : > { %1391 = vrot.lane.b32.xlu2 %v2522_v4, %s2179_s20  ;;  %1421 = vrot.lane.b32.xlu1 %v2524_v0, %s2180_s23  ;;  %v821_v0 = vpack.i.b16 %v2383_v42, %v2383_v42 }
 0x2d1   : > { %1178 = vrot.lane.b32.xlu0 %v2490_v3, %s2174_s12 }
 0x2d2   : > { %v823_v28 = vperm.slane %v821_v0, 0 }
 0x2d4   : > { %v2655_v42 = vunpack.c.l.bf16 %v823_v28 }
 0x2d8   : > { %1176 = vrot.lane.b32.xlu2 %v2488_v16, %s2174_s12  ;;  %v824_v16 = vpack.i.b16 %v2385_v43, %v2385_v43  ;;  %v799_v43 = vpack.i.b16 %v2378_v41, %v2378_v41  ;;  %v798_v41 = vperm.slane %v796_v44, 0 }
 0x2d9   : > { %1425 = vrot.lane.b32.xlu0 %v2526_v5, %s2180_s23 }
 0x2da   : > { %v2631_v31 = vpop.permute.xlu2 %1036  ;;  %v801_v47 = vperm.slane %v799_v43, 0 }
 0x2dc   : > { %v2663_v17 = vunpack.c.l.bf16 %v801_v47  ;;  %v1264_v47 = vunpack.c.h.b16 %v2549_v49 }
 0x2e0   : > { %1423 = vrot.lane.b32.xlu2 %v2528_v7, %s2180_s23  ;;  %v826_v7 = vperm.slane %v824_v16, 0  ;;  %v2669_v16 = vunpack.c.l.bf16 %v798_v41 }
 0x2e2   : > { %v882_v13 = vpop.permute.xlu2 %881  ;;  %v2652_v34 = vunpack.c.l.bf16 %v826_v7 }
 0x2ea   : > { %v863_v14 = vpop.permute.xlu2 %862 }
 0x2f2   : > { %v2635_v60 = vpop.permute.xlu2 %901  ;;  %v867_v61 = vpop.permute.xlu1 %866 }
 0x2f3   : > { %v884_v62 = vpop.permute.xlu0 %883 }
 0x2f4   : > { %v886_v4 = vsel %vm514_vm15, %v882_v13, %v884_v62 }
 0x2f5   : > { %v889_v5 = vsel %vm427_vm11, %v886_v4, 0 }
 0x2f6   : > { %v892_v29 = vunpack.c.l.bf16 %v889_v5 }
 0x2f8   : > { %v894_v37 = vmul.f32 %v892_v29, %v2652_v34 }
 0x2fa   : > { %v1013_v63 = vpop.permute.xlu2 %1012  ;;  %v2637_v1 = vpop.permute.xlu1 %905 }
 0x2fb   : > { %v1015_v3 = vpop.permute.xlu0 %1014 }
 0x2fc   : > { %v1017_v35 = vsel %vm671_vm4, %v1013_v63, %v1015_v3 }
 0x2fd   : > { %v1020_v45 = vsel %vm427_vm11, %v1017_v35, 0 }
 0x2fe   : > { %v1023_v50 = vunpack.c.l.bf16 %v1020_v45 }
 0x300   : > { %v1025_v3 = vmul.f32 %v1023_v50, %v2652_v34 }
 0x302   : > { %v2645_v30 = vpop.permute.xlu2 %993  ;;  %v880_v19 = vpop.permute.xlu1 %879 }
 0x303   : > { %v2647_v32 = vpop.permute.xlu0 %997  ;;  %v885_v33 = vsel %vm514_vm15, %v880_v19, %v882_v13 }
 0x304   : > { %v891_v36 = vunpack.c.l.bf16 %v885_v33 }
 0x306   : > { %v893_v38 = vmul.f32 %v891_v36, %v2655_v42 }
 0x308   : > { %v895_v48 = vpack.c.bf16 %v894_v37, %v893_v38 }
 0x30a   : > { %v812_v51 = vpop.permute.xlu2 %811  ;;  %v1011_v52 = vpop.permute.xlu1 %1010  ;;  %v910_v53 = vunpack.c.l.b16 %v895_v48  ;;  %v911_v57 = vunpack.c.h.b16 %v895_v48 }
 0x30b   : > { %v865_v58 = vpop.permute.xlu0 %864  ;;  %v1016_v12 = vsel %vm671_vm4, %v1011_v52, %v1013_v63  ;;  %v816_v5 = vsel %vm427_vm11, %v812_v51, 0 }
 0x30c   : > { %v868_v23 = vsel %vm489_vm14, %v863_v14, %v865_v58  ;;  %v869_v24 = vsel %vm489_vm14, %v865_v58, %v867_v61  ;;  %v1022_v40 = vunpack.c.l.bf16 %v1016_v12  ;;  %v912_v13 = vpack.c.b16 %v910_v53, %v910_v53 }
 0x30d   : > { %v872_v25 = vsel %vm393_vm10, 0, %v868_v23  ;;  %v875_v39 = vunpack.c.l.bf16 %v869_v24  ;;  %v913_v62 = vpack.c.b16 %v911_v57, %v911_v57  ;;  %v828_v19 = vunpack.c.l.bf16 %v816_v5 }
 0x30e   : > { %v874_v4 = vunpack.c.l.bf16 %v872_v25  ;;  %v1024_v0 = vmul.f32 %v1022_v40, %v2655_v42  ;;  %v927_v14 = vsel %vm469_vm12, %v912_v13, 0  ;;  %v1285_v58 = vunpack.c.h.b16 %v2557_v59 }
 0x30f   : > { %v877_v63 = vmul.f32 %v875_v39, %v2663_v17  ;;  %v930_v61 = vsel %vm469_vm12, %v913_v62, 0  ;;  %938 = vmatpush.bf16.msrb.mxu2 %v927_v14  ;;  %v832_v41 = vmul.f32 %v2652_v34, %v828_v19  ;;  %v2689_v39 = vld [vmem:[#allocation7 + $0x4] sm:$0xf]  ;;  %v1266_v13 = vpack.c.b16 %v1264_v47, %v1264_v47 }
 0x310   : > { %v876_v7 = vmul.f32 %v874_v4, %v2669_v16  ;;  %v1026_v28 = vpack.c.bf16 %v1025_v3, %v1024_v0  ;;  %951 = vmatpush.bf16.msrb.mxu3 %v930_v61  ;;  %v1287_v14 = vpack.c.b16 %v1285_v58, %v1285_v58 }
 0x312   : > { %v878_v29 = vpack.c.bf16 %v877_v63, %v876_v7  ;;  %v787_v33 = vpop.permute.xlu2 %786  ;;  %v810_v43 = vpop.permute.xlu1 %809  ;;  %v1041_v35 = vunpack.c.l.b16 %v1026_v28  ;;  %v1042_v36 = vunpack.c.h.b16 %v1026_v28 }
 0x313   : > { %v904_v37 = vpop.permute.xlu0 %903  ;;  %v813_v38 = vsel %vm427_vm11, %v810_v43, %v812_v51 }
 0x314   : > { %v827_v44 = vunpack.c.l.bf16 %v813_v38  ;;  %v897_v45 = vunpack.c.l.b16 %v878_v29  ;;  %v898_v48 = vunpack.c.h.b16 %v878_v29  ;;  %v1043_v50 = vpack.c.b16 %v1041_v35, %v1041_v35 }
 0x315   : > { %v1044_v57 = vpack.c.b16 %v1042_v36, %v1042_v36  ;;  %v907_v12 = vsel %vm2973_vm2, %v2635_v60, %v904_v37  ;;  %v908_v51 = vsel %vm2973_vm2, %v904_v37, %v2637_v1 }
 0x316   : > { %v831_v52 = vmul.f32 %v2655_v42, %v827_v44  ;;  %v899_v53 = vpack.c.b16 %v897_v45, %v897_v45  ;;  %v900_v23 = vpack.c.b16 %v898_v48, %v898_v48  ;;  %v1057_v25 = vsel %vm469_vm12, %v1043_v50, 0 }
 0x317   : > { %v1060_v59 = vsel %vm469_vm12, %v1044_v57, 0 }
 0x318   : > { %v833_v24 = vpack.c.bf16 %v832_v41, %v831_v52  ;;  %v916_v49 = vsel %vm469_vm12, %v899_v53, %v907_v12  ;;  %v920_v40 = vsel %vm469_vm12, %v900_v23, %v908_v51 }
 0x319   : > { %939 = vmatpush.bf16.msrb.mxu2 %v916_v49  ;;  %952 = vmatpush.bf16.msrb.mxu3 %v920_v40 }
 0x31a   : > { %v1280_v60 = vpop.permute.xlu2 %1279  ;;  %v785_v62 = vpop.permute.xlu1 %784  ;;  %v840_v3 = vunpack.c.l.b16 %v833_v24  ;;  %v841_v1 = vunpack.c.h.b16 %v833_v24 }
 0x31b   : > { %v996_v4 = vpop.permute.xlu0 %995  ;;  %v1282_v0 = vsel %vm2973_vm2, %v2563_v9, %v1280_v60  ;;  %v788_v63 = vsel %vm393_vm10, %v785_v62, %v787_v33  ;;  %v791_v5 = vsel %vm393_vm10, 0, %v785_v62  ;;  %v2722_v62 = vld [vmem:[#allocation7] sm:$0xf] }
 0x31c   : > { %v999_v61 = vsel %vm2972_vm3, %v2645_v30, %v996_v4  ;;  %v1000_v7 = vsel %vm2972_vm3, %v996_v4, %v2647_v32  ;;  %v1293_v28 = vsel %vm345_vm0, %v1266_v13, %v1282_v0  ;;  %v802_v29 = vunpack.c.l.bf16 %v791_v5  ;;  %1926 = vmatmul.msk.bf16.vlgmr.msrb.gmra.mxu2 %vm922_vm7, %v2689_v39  ;;  %1927 = vmatmul.msk.bf16.vlgmr.msrb.gmra.mxu3 %vm922_vm7, %v2689_v39 }
 0x31d   : > { %1068 = vmatpush.bf16.msra.mxu2 %v1057_v25  ;;  %1081 = vmatpush.bf16.msra.mxu3 %v1060_v59  ;;  %v1003_v19 = vsel %vm393_vm10, 0, %v999_v61  ;;  %v1006_v9 = vunpack.c.l.bf16 %v1000_v7  ;;  %v803_v43 = vunpack.c.l.bf16 %v788_v63  ;;  %v842_v33 = vpack.c.b16 %v840_v3, %v840_v3  ;;  %v2727_v3 = vld [vmem:[#allocation7 + $0x8] sm:$0xf] }
 0x31e   : > { %v1005_v35 = vunpack.c.l.bf16 %v1003_v19  ;;  %v806_v30 = vmul.f32 %v2669_v16, %v802_v29  ;;  %v843_v36 = vpack.c.b16 %v841_v1, %v841_v1  ;;  %v1297_v32 = vsel %vm469_vm12, %v1293_v28, %v1287_v14 }
 0x31f   : > { %v1008_v37 = vmul.f32 %v1006_v9, %v2663_v17  ;;  %v807_v38 = vmul.f32 %v2663_v17, %v803_v43  ;;  %v962_v44 = vsel %vm469_vm12, %v842_v33, 0  ;;  %v1098_v13 = vsel %vm345_vm0, %v2480_v10, 0 }
 0x320   : > { %v1007_v45 = vmul.f32 %v1005_v35, %v2669_v16  ;;  %973 = vmatpush.bf16.msra.mxu0 %v962_v44  ;;  %v965_v47 = vsel %vm469_vm12, %v843_v36, 0  ;;  %v1298_v5 = vsel %vm567_vm13, %v2572_v27, 0  ;;  %v2754_v44 = vld [vmem:[%s2965_s3] sm:$0xf] }
 0x321   : > { %v808_v48 = vpack.c.bf16 %v807_v38, %v806_v30  ;;  %986 = vmatpush.bf16.msra.mxu1 %v965_v47 }
 0x322   : > { %v1009_v50 = vpack.c.bf16 %v1008_v37, %v1007_v45  ;;  %v1035_v41 = vpop.permute.xlu1 %1034  ;;  %v1372_v58 = vpop.permute.xlu2 %1371 }
 0x323   : > { %v1368_v52 = vpop.permute.xlu0 %1367  ;;  %v835_v53 = vunpack.c.l.b16 %v808_v48  ;;  %v836_v57 = vunpack.c.h.b16 %v808_v48  ;;  %v1039_v49 = vsel %vm2974_vm5, %v1035_v41, %v2631_v31  ;;  %v1100_v31 = vsel %vm345_vm0, %v2482_v11, 0 }
 0x324   : > { %v1029_v12 = vunpack.c.h.b16 %v1009_v50  ;;  %v1028_v59 = vunpack.c.l.b16 %v1009_v50 }
 0x325   : > { %v837_v23 = vpack.c.b16 %v835_v53, %v835_v53  ;;  %v838_v51 = vpack.c.b16 %v836_v57, %v836_v57 }
 0x326   : > { %v1031_v24 = vpack.c.b16 %v1029_v12, %v1029_v12  ;;  %v1030_v10 = vpack.c.b16 %v1028_v59, %v1028_v59 }
 0x327   : > { %v846_v40 = vsel %vm469_vm12, %v837_v23, %v2569_v26  ;;  %v850_v25 = vsel %vm469_vm12, %v838_v51, %v2554_v56  ;;  %v1300_v26 = vsel %vm567_vm13, %v1297_v32, 0 }
 0x328   : > { %974 = vmatpush.bf16.msra.mxu0 %v846_v40  ;;  %987 = vmatpush.bf16.msra.mxu1 %v850_v25  ;;  %v1051_v60 = vsel %vm469_vm12, %v1031_v24, %v1039_v49 }
 0x329   : > { %1082 = vmatpush.bf16.msra.mxu3 %v1051_v60 }
 0x32a   : > { %v1370_v56 = vpop.permute.xlu1 %1369  ;;  %v1392_v63 = vpop.permute.xlu2 %1391 }
 0x32b   : > { %v1033_v1 = vpop.permute.xlu0 %1032  ;;  %1928 = vmatmul.msk.bf16.vlgmr.msra.gmra.mxu0 %vm922_vm7, %v2722_v62  ;;  %1929 = vmatmul.msk.bf16.vlgmr.msra.gmra.mxu1 %vm922_vm7, %v2722_v62  ;;  %v1373_v0 = vsel %vm2972_vm3, %v1368_v52, %v1370_v56  ;;  %v1374_v14 = vsel %vm2972_vm3, %v1370_v56, %v1372_v58  ;;  %vm2983_vm3 = vcmask 97280  }
 0x32c   : > { %1109 = vmatpush.bf16.msrb.mxu0 %v1098_v13  ;;  %1122 = vmatpush.bf16.msrb.mxu1 %v1100_v31  ;;  %v1038_v4 = vsel %vm2974_vm5, %v1033_v1, %v1035_v41  ;;  %v1377_v61 = vsel %vm393_vm10, 0, %v1373_v0  ;;  %v1380_v28 = vunpack.c.l.bf16 %v1374_v14  ;;  %vm2984_vm2 = vmmov %vm2983_vm3 }
 0x32d   : > { %1322 = vmatpush.bf16.msrb.mxu3 %v1300_v26  ;;  %v1047_v11 = vsel %vm469_vm12, %v1030_v10, %v1038_v4  ;;  %v1379_v7 = vunpack.c.l.bf16 %v1377_v61 }
 0x32e   : > { %1931 = vmatmul.msk.bf16.vlgmr.msra.gmra.mxu3 %vm922_vm7, %v2727_v3  ;;  %1069 = vmatpush.bf16.msra.mxu2 %v1047_v11  ;;  %v1382_v30 = vmul.f32 %v1380_v28, %v2396_v55 }
 0x32f   : > { %v1381_v27 = vmul.f32 %v1379_v7, %v2394_v54 }
 0x331   : > { %1930 = vmatmul.msk.bf16.vlgmr.msra.gmra.mxu2 %vm922_vm7, %v2727_v3  ;;  %v1383_v45 = vpack.c.bf16 %v1382_v30, %v1381_v27 }
 0x332   : > { %1309 = vmatpush.bf16.msrb.mxu2 %v1298_v5  ;;  %v1396_v29 = vpop.permute.xlu1 %1395  ;;  %v1177_v37 = vpop.permute.xlu2 %1176 }
 0x333   : > { %v1394_v19 = vpop.permute.xlu0 %1393  ;;  %v1409_v58 = vunpack.c.l.b16 %v1383_v45  ;;  %v1410_v4 = vunpack.c.h.b16 %v1383_v45 }
 0x334   : > { %v1397_v9 = vsel %vm671_vm4, %v1392_v63, %v1394_v19  ;;  %v1398_v43 = vsel %vm671_vm4, %v1394_v19, %v1396_v29 }
 0x335   : > { %v1403_v33 = vunpack.c.l.bf16 %v1397_v9  ;;  %v1401_v35 = vsel %vm427_vm11, %v1398_v43, 0  ;;  %v1411_v40 = vpack.c.b16 %v1409_v58, %v1409_v58  ;;  %v1412_v9 = vpack.c.b16 %v1410_v4, %v1410_v4 }
 0x336   : > { %v1404_v36 = vunpack.c.l.bf16 %v1401_v35 }
 0x337   : > { %v1405_v32 = vmul.f32 %v1403_v33, %v2408_v8 }
 0x338   : > { %v1406_v38 = vmul.f32 %v1404_v36, %v2406_v6 }
 0x33a   : > { %v1160_v47 = vpop.permute.xlu1 %1159  ;;  %v1407_v50 = vpack.c.bf16 %v1406_v38, %v1405_v32  ;;  %v1424_v24 = vpop.permute.xlu2 %1423 }
 0x33b   : > { %v1158_v48 = vpop.permute.xlu0 %1157  ;;  %1932 = vmatmul.msk.bf16.vlgmr.msrb.gmra.mxu0 %vm2975_vm9, %v2754_v44  ;;  %1933 = vmatmul.msk.bf16.vlgmr.msrb.gmra.mxu1 %vm2975_vm9, %v2754_v44  ;;  %vm2987_vm9 = vmmov %vm2984_vm2 }
 0x33c   : > { %v1164_v41 = vsel %vm393_vm10, 0, %v1158_v48  ;;  %v1161_v52 = vsel %vm393_vm10, %v1158_v48, %v1160_v47  ;;  %v1430_v51 = vunpack.c.l.b16 %v1407_v50  ;;  %v1431_v5 = vunpack.c.h.b16 %v1407_v50 }
 0x33d   : > { %v1166_v53 = vunpack.c.l.bf16 %v1164_v41  ;;  %v1167_v57 = vunpack.c.l.bf16 %v1161_v52 }
 0x33e   : > { %1936 = vmatmul.msk.bf16.vlgmr.msrb.gmra.mxu3 %vm2983_vm3, %v2444_v15  ;;  %v1433_v33 = vpack.c.b16 %v1431_v5, %v1431_v5  ;;  %vm2985_vm3 = vmmov %vm2984_vm2 }
 0x33f   : > { %v1168_v12 = vmul.f32 %v1166_v53, %v2394_v54  ;;  %v1169_v23 = vmul.f32 %v1167_v57, %v2396_v55  ;;  %v1432_v54 = vpack.c.b16 %v1430_v51, %v1430_v51 }
 0x341   : > { %1935 = vmatmul.msk.bf16.vlgmr.msrb.gmra.mxu2 %vm2984_vm2, %v2444_v15  ;;  %v1170_v49 = vpack.c.bf16 %v1169_v23, %v1168_v12 }
 0x342   : > { %v1422_v25 = vpop.permute.xlu1 %1421 }
 0x343   : > { %v1179_v59 = vpop.permute.xlu0 %1178  ;;  %v1427_v60 = vsel %vm2974_vm5, %v1422_v25, %v1424_v24  ;;  %v1191_v1 = vunpack.c.l.b16 %v1170_v49  ;;  %v1192_v10 = vunpack.c.h.b16 %v1170_v49 }
 0x344   : > { %v1180_v13 = vsel %vm427_vm11, %v1177_v37, %v1179_v59  ;;  %v1183_v31 = vsel %vm427_vm11, %v1179_v59, 0  ;;  %v1436_v26 = vsel %vm345_vm0, %v1411_v40, %v1427_v60 }
 0x345   : > { %v1185_v56 = vunpack.c.l.bf16 %v1180_v13  ;;  %v1186_v55 = vunpack.c.l.bf16 %v1183_v31  ;;  %v1441_v15 = vsel %vm469_vm12, %v1436_v26, %v1432_v54  ;;  %v1193_v61 = vpack.c.b16 %v1191_v1, %v1191_v1 }
 0x346   : > { %v1444_v63 = vsel %vm567_vm13, %v1441_v15, 0  ;;  %v1194_v7 = vpack.c.b16 %v1192_v10, %v1192_v10 }
 0x347   : > { %v1187_v0 = vmul.f32 %v1185_v56, %v2408_v8  ;;  %v1188_v11 = vmul.f32 %v1186_v55, %v2406_v6  ;;  %1455 = vmatpush.bf16.msra.mxu2 %v1444_v63  ;;  %v1205_v30 = vsel %vm345_vm0, %v1193_v61, %v2492_v20 }
 0x348   : > { %v1207_v36 = vsel %vm345_vm0, %v1194_v7, %v2494_v21 }
 0x349   : > { %v1189_v14 = vpack.c.bf16 %v1188_v11, %v1187_v0 }
 0x34b   : > { %v1200_v28 = vunpack.c.l.b16 %v1189_v14  ;;  %v1201_v29 = vunpack.c.h.b16 %v1189_v14  ;;  %v1426_v19 = vpop.permute.xlu0 %1425 }
 0x34c   : > { %v1428_v43 = vsel %vm2974_vm5, %v1424_v24, %v1426_v19  ;;  %vm2986_vm5 = vmmov %vm2984_vm2 }
 0x34d   : > { %v1202_v35 = vpack.c.b16 %v1200_v28, %v1200_v28  ;;  %v1203_v27 = vpack.c.b16 %v1201_v29, %v1201_v29  ;;  %v1439_v8 = vsel %vm345_vm0, %v1412_v9, %v1428_v43 }
 0x34e   : > { %v1443_v6 = vsel %vm469_vm12, %v1439_v8, %v1433_v33 }
 0x34f   : > { %v1446_v32 = vsel %vm567_vm13, %v1443_v6, 0  ;;  %v1209_v37 = vsel %vm469_vm12, %v1205_v30, %v1202_v35  ;;  %v1211_v38 = vsel %vm469_vm12, %v1207_v36, %v1203_v27 }
 0x350   : > { %1468 = vmatpush.bf16.msra.mxu3 %v1446_v32  ;;  %v1328_v45 = vsel %vm567_vm13, %v1209_v37, 0  ;;  %v1330_v47 = vsel %vm567_vm13, %v1211_v38, 0 }
 0x351   : > { %1339 = vmatpush.bf16.msra.mxu0 %v1328_v45  ;;  %1352 = vmatpush.bf16.msra.mxu1 %v1330_v47 }
 0x352   : > { %1939 = vmatmul.msk.bf16.vlgmr.msra.gmra.mxu2 %vm2984_vm2, %v2468_v2 }
 0x353   : > { %1940 = vmatmul.msk.bf16.vlgmr.msra.gmra.mxu3 %vm2985_vm3, %v2468_v2 }
 0x354   : > { %1937 = vmatmul.msk.bf16.vlgmr.msra.gmra.mxu0 %vm2986_vm5, %v2420_v18  ;;  %1938 = vmatmul.msk.bf16.vlgmr.msra.gmra.mxu1 %vm2987_vm9, %v2420_v18 }
 0x39f   : > { %v941_v20 = vpop.f32.mrf.mxu2  ;;  %v954_v21 = vpop.f32.mrf.mxu3 }
 0x3a7   : > { %v943_v48 = vpop.f32.mrf.mxu2  ;;  %v956_v50 = vpop.f32.mrf.mxu3 }
 0x3a8   : > { %v976_v41 = vpop.f32.mrf.mxu0  ;;  %v989_v53 = vpop.f32.mrf.mxu1 }
 0x3a9   : > { %v977_v52 = vadd.f32 %v976_v41, %v941_v20  ;;  %v990_v57 = vadd.f32 %v989_v53, %v954_v21 }
 0x3b0   : > { %v978_v58 = vpop.f32.mrf.mxu0  ;;  %v991_v23 = vpop.f32.mrf.mxu1 }
 0x3b1   : > { %v1084_v12 = vpop.f32.mrf.mxu3 }
 0x3b2   : > { %v1089_v51 = vadd.f32 %v1084_v12, %v990_v57 }
 0x3b4   : > { %v1071_v24 = vpop.f32.mrf.mxu2 }
 0x3b5   : > { %v1088_v2 = vadd.f32 %v1071_v24, %v977_v52 }
 0x3b8   : > { %v1111_v49 = vpop.f32.mrf.mxu0  ;;  %v1124_v59 = vpop.f32.mrf.mxu1 }
 0x3b9   : > { %v1086_v40 = vpop.f32.mrf.mxu3  ;;  %v2796_v25 = vadd.f32 %v1111_v49, %v1088_v2  ;;  %v2798_v18 = vadd.f32 %v1124_v59, %v1089_v51 }
 0x3bc   : > { %v1073_v60 = vpop.f32.mrf.mxu2 }
 0x3c0   : > { %v1113_v31 = vpop.f32.mrf.mxu0  ;;  %v1126_v26 = vpop.f32.mrf.mxu1 }
 0x3c1   : > { %v1324_v13 = vpop.f32.mrf.mxu3 }
 0x3c4   : > { %v1311_v54 = vpop.f32.mrf.mxu2 }
 0x3c9   : > { %v1326_v56 = vpop.f32.mrf.mxu3 }
 0x3cc   : > { %v1313_v55 = vpop.f32.mrf.mxu2 }
 0x3d1   : > { %v1341_v1 = vpop.f32.mrf.mxu0  ;;  %v1354_v10 = vpop.f32.mrf.mxu1 }
 0x3d2   : > { %v1342_v15 = vadd.f32 %v1341_v1, %v1311_v54  ;;  %v1355_v4 = vadd.f32 %v1354_v10, %v1324_v13 }
 0x3d5   : > { %v1457_v0 = vpop.f32.mrf.mxu2 }
 0x3d6   : > { %v1474_v11 = vadd.f32 %v1457_v0, %v1342_v15  ;;  %v1470_v63 = vpop.f32.mrf.mxu3 }
 0x3d7   : > { %v1475_v5 = vadd.f32 %v1470_v63, %v1355_v4 }
 0x3d8   : > { %v1476_v14 = vadd.f32 %v1474_v11, %v2503_v46 }
 0x3d9   : > { %v1477_v61 = vadd.f32 %v1475_v5, %v2503_v46  ;;  %v1343_v7 = vpop.f32.mrf.mxu0  ;;  %v1356_v28 = vpop.f32.mrf.mxu1 }
 0x3da   : > { %v1478_v29 = vmax.f32 %v1476_v14, 0.0 }
 0x3db   : > { %v1479_v19 = vmax.f32 %v1477_v61, 0.0 }
 0x3dd   : > { %v1459_v9 = vpop.f32.mrf.mxu2  ;;  %v1480_v43 = vpack.c.bf16 %v1479_v19, %v1478_v29 }
 0x3de   : > { %v1472_v33 = vpop.f32.mrf.mxu3 }
 0x3df   : > { %1482 = vrot.lane.b32.xlu1 %v1480_v43, %s2172_s22 }
 0x451   : > { %v1483_v35 = vpop.permute.xlu1 %1482 }
 0x452   : > { %v1484_v27 = vrot.slane %v1483_v35, 4 }
 0x454   : > { %v1485_v8 = vsel %vm374_vm8, %v1484_v27, %v1483_v35  ;;  %1489 = vst.msk [vmem:[#allocation3 + $0x8] sm:$0xf] %vm776_vm6, %v1484_v27 }
 0x455   : > { %1488 = vst.msk [vmem:[#allocation3] sm:$0xff] %vm2531_vm1, %v1485_v8 }
 0x45b   : > { %v1542_v6 = vld [vmem:[#allocation3 + $0x8] sm:$0xf] }
 0x45c   : > { %v1544_v46 = vunpack.c.l.b16 %v1542_v6  ;;  %v1490_v30 = vld [vmem:[#allocation3] sm:$0xff] }
 0x45d   : > { %v1493_v36 = vunpack.c.h.b16 %v1490_v30  ;;  %v1492_v38 = vunpack.c.l.b16 %v1490_v30 }
 0x45e   : > { %v1545_v32 = vpack.c.b16 %v1544_v46, %v1544_v46 }
 0x45f   : > { %v2807_v37 = vpack.c.b16 %v1493_v36, %v1493_v36  ;;  %v2814_v45 = vpack.c.b16 %v1492_v38, %v1492_v38  ;;  %v1766_v36 = vld.sshfl [vmem:[#allocation1] sm:$0xff pattern:$0x73625140] }
 0x460   : > { %1567 = vrot.lane.b32.xlu2 %v1545_v32, %s2176_s18 }
 0x461   : > { %1565 = vrot.lane.b32.xlu1 %v2807_v37, %s2176_s18  ;;  %1512 = vrot.lane.b32.xlu0 %v2807_v37, %s2174_s12 }
 0x468   : > { %1550 = vrot.lane.b32.xlu2 %v1545_v32, %s2175_s13 }
 0x469   : > { %1498 = vrot.lane.b32.xlu1 %v2807_v37, %s2173_s25  ;;  %1496 = vrot.lane.b32.xlu0 %v2814_v45, %s2173_s25 }
 0x470   : > { %1510 = vrot.lane.b32.xlu2 %v2814_v45, %s2174_s12  ;;  %s333_s12 = sand.u32 1, %s2157_s28  }
 0x471   : > { %1691 = vrot.lane.b32.xlu1 %v1545_v32, %s2179_s20  ;;  %1546 = vrot.lane.b32.xlu0 %v2814_v45, %s2175_s13 }
 0x478   : > { %1563 = vrot.lane.b32.xlu2 %v2814_v45, %s2176_s18 }
 0x479   : > { %1548 = vrot.lane.b32.xlu1 %v2807_v37, %s2175_s13  ;;  %1585 = vrot.lane.b32.xlu0 %v2814_v45, %s2177_s17  ;;  %s1916_s13 = sshll.u32 %s333_s12, 4 }
 0x47a   : > { %s2924_s18 = scalar_lea.vmem [#allocation9], %s1916_s13  ;;  %s2115_s13 = scalar_lea.hbm %s2970_s8, 32 }
 0x47b   : > { %s1821_s21 = sshll.u32 %s2924_s18, 4  ;;  %s1822_s21 = int_to_ptr.vmem [resolvable:$true] %s1821_s21 }
 0x480   : > { %1589 = vrot.lane.b32.xlu2 %v1545_v32, %s2177_s17 }
 0x481   : > { %1587 = vrot.lane.b32.xlu1 %v2807_v37, %s2177_s17  ;;  %1689 = vrot.lane.b32.xlu0 %v2807_v37, %s2179_s20  ;;  %s1958_s17 = sshll.u32 %s2249_s9, 4  ;;  %s1808_s9 = scalar_lea.sflag [#allocation6], %s333_s12 }
 0x488   : > { %1687 = vrot.lane.b32.xlu2 %v2814_v45, %s2179_s20 }
 0x489   : > { %1672 = vrot.lane.b32.xlu1 %v2807_v37, %s2178_s19  ;;  %1670 = vrot.lane.b32.xlu0 %v2814_v45, %s2178_s19 }
 0x490   : > { %1674 = vrot.lane.b32.xlu2 %v1545_v32, %s2178_s19 }
 0x491   : > { %1711 = vrot.lane.b32.xlu1 %v2807_v37, %s2180_s23  ;;  %1709 = vrot.lane.b32.xlu0 %v2814_v45, %s2180_s23 }
 0x498   : > { %1713 = vrot.lane.b32.xlu2 %v1545_v32, %s2180_s23  ;;  %v1767_v32 = vld.sshfl [vmem:[#allocation1 + $0x8] sm:$0xff pattern:$0x73625140]  ;;  %s1820_s23 = scalar_lea.hbm %s2970_s8, %s1958_s17 }
 0x499   : > { %1132 = vperm.xlu0 %2034, %v366_v22   ;;  %s1823_s24 = sshll.u32 %s1820_s23, 4  ;;  %s1824_s24 = int_to_ptr.hbm [resolvable:$true] %s1823_s24 }
 0x49a   : > { %s2109_s26 = sshra.s32 %s1824_s24, 4  ;;  %s2110_s26 = int_to_ptr.hbm [resolvable:$true] %s2109_s26 }
 0x49b   : > { %s2111_s10 = scalar_lea.hbm %s2110_s26, 16  ;;  %p2116_p3 = scmp.lt.s32.totalorder %s2110_s26, %s2970_s8 }
 0x49c   : > { %p2112_p0 = scmp.ne.s32.totalorder %s2110_s26, %s2111_s10  ;;  %p2117_p4 = scmp.lt.s32.totalorder %s2115_s13, %s2111_s10 }
 0x49e   : > { %p2113_p1 = pnand %p2112_p0, %p2266_p5  ;;  %p2118_p7 = por %p2117_p4, %p2116_p3 }
 0x4a0   : > { %p2114_p2 = pneg %p2113_p1 }
 0x4a2   : > { %p2119_p8 = pnand %p2118_p7, %p2114_p2 }
 0x4ba   : > { %v1568_v47 = vpop.permute.xlu2 %1567 }
 0x4c2   : > { %v2852_v20 = vpop.permute.xlu2 %1550 }
 0x4ca   : > { %v1511_v21 = vpop.permute.xlu2 %1510 }
 0x4d2   : > { %v1564_v48 = vpop.permute.xlu2 %1563 }
 0x4d3   : > { %v1566_v50 = vpop.permute.xlu1 %1565  ;;  %v1513_v41 = vpop.permute.xlu0 %1512 }
 0x4d4   : > { %v1569_v52 = vsel %vm514_vm15, %v1564_v48, %v1566_v50  ;;  %v1570_v53 = vsel %vm514_vm15, %v1566_v50, %v1568_v47  ;;  %v1514_v57 = vsel %vm427_vm11, %v1511_v21, %v1513_v41  ;;  %v1517_v58 = vsel %vm427_vm11, %v1513_v41, 0 }
 0x4d5   : > { %v1573_v12 = vsel %vm427_vm11, %v1570_v53, 0  ;;  %v1575_v23 = vunpack.c.l.bf16 %v1569_v52  ;;  %v1519_v51 = vunpack.c.l.bf16 %v1514_v57  ;;  %v1520_v24 = vunpack.c.l.bf16 %v1517_v58 }
 0x4d6   : > { %v1576_v2 = vunpack.c.l.bf16 %v1573_v12  ;;  %v1768_v21 = vsel %vm345_vm0, %v1766_v36, 0  ;;  %v1770_v48 = vsel %vm345_vm0, %v1767_v32, 0  ;;  %vm2988_vm0 = vcmask 916480  }
 0x4d7   : > { %v1577_v49 = vmul.f32 %v1575_v23, %v2655_v42  ;;  %v1521_v40 = vmul.f32 %v1519_v51, %v2655_v42  ;;  %v1522_v59 = vmul.f32 %v1520_v24, %v2652_v34  ;;  %vm2989_vm8 = vmmov %vm2988_vm0 }
 0x4d8   : > { %v1578_v60 = vmul.f32 %v1576_v2, %v2652_v34 }
 0x4d9   : > { %v1523_v13 = vpack.c.bf16 %v1522_v59, %v1521_v40 }
 0x4da   : > { %v1579_v31 = vpack.c.bf16 %v1578_v60, %v1577_v49  ;;  %v1590_v38 = vpop.permute.xlu2 %1589 }
 0x4db   : > { %v1499_v26 = vpop.permute.xlu1 %1498  ;;  %v1497_v54 = vpop.permute.xlu0 %1496  ;;  %v1530_v56 = vunpack.c.l.b16 %v1523_v13  ;;  %v1531_v55 = vunpack.c.h.b16 %v1523_v13 }
 0x4dc   : > { %v1500_v1 = vsel %vm393_vm10, %v1497_v54, %v1499_v26  ;;  %v1503_v10 = vsel %vm393_vm10, 0, %v1497_v54  ;;  %v1594_v15 = vunpack.c.l.b16 %v1579_v31  ;;  %v1595_v4 = vunpack.c.h.b16 %v1579_v31 }
 0x4dd   : > { %v1505_v0 = vunpack.c.l.bf16 %v1503_v10  ;;  %v1506_v11 = vunpack.c.l.bf16 %v1500_v1  ;;  %v1532_v63 = vpack.c.b16 %v1530_v56, %v1530_v56  ;;  %v1533_v5 = vpack.c.b16 %v1531_v55, %v1531_v55 }
 0x4de   : > { %v1596_v14 = vpack.c.b16 %v1594_v15, %v1594_v15  ;;  %v1597_v61 = vpack.c.b16 %v1595_v4, %v1595_v4 }
 0x4df   : > { %v1507_v7 = vmul.f32 %v1505_v0, %v2669_v16  ;;  %v1508_v28 = vmul.f32 %v1506_v11, %v2663_v17  ;;  %v1639_v29 = vsel %vm469_vm12, %v1532_v63, 0  ;;  %v1642_v19 = vsel %vm469_vm12, %v1533_v5, 0 }
 0x4e0   : > { %1650 = vmatpush.bf16.msrb.mxu2 %v1639_v29  ;;  %1663 = vmatpush.bf16.msrb.mxu3 %v1642_v19  ;;  %v1607_v9 = vsel %vm469_vm12, %v1596_v14, 0  ;;  %v1610_v43 = vsel %vm469_vm12, %v1597_v61, 0 }
 0x4e1   : > { %v1509_v33 = vpack.c.bf16 %v1508_v28, %v1507_v7  ;;  %1618 = vmatpush.bf16.msrb.mxu0 %v1607_v9  ;;  %1631 = vmatpush.bf16.msrb.mxu1 %v1610_v43 }
 0x4e2   : > { %v1688_v12 = vpop.permute.xlu2 %1687 }
 0x4e3   : > { %v1692_v35 = vpop.permute.xlu1 %1691  ;;  %v1547_v27 = vpop.permute.xlu0 %1546  ;;  %v1525_v8 = vunpack.c.l.b16 %v1509_v33  ;;  %v1526_v6 = vunpack.c.h.b16 %v1509_v33 }
 0x4e5   : > { %v1527_v46 = vpack.c.b16 %v1525_v8, %v1525_v8  ;;  %v1528_v30 = vpack.c.b16 %v1526_v6, %v1526_v6 }
 0x4e7   : > { %v1536_v22 = vsel %vm469_vm12, %v1527_v46, %v2814_v45  ;;  %v1540_v47 = vsel %vm469_vm12, %v1528_v30, %v2807_v37 }
 0x4e8   : > { %1651 = vmatpush.bf16.msrb.mxu2 %v1536_v22  ;;  %1664 = vmatpush.bf16.msrb.mxu3 %v1540_v47 }
 0x4ea   : > { %v1675_v4 = vpop.permute.xlu2 %1674 }
 0x4eb   : > { %v1549_v50 = vpop.permute.xlu1 %1548  ;;  %v1586_v41 = vpop.permute.xlu0 %1585  ;;  %1943 = vmatmul.msk.bf16.vlgmr.msrb.gmra.mxu2 %vm922_vm7, %v2722_v62  ;;  %1944 = vmatmul.msk.bf16.vlgmr.msrb.gmra.mxu3 %vm922_vm7, %v2722_v62 }
 0x4ec   : > { %1779 = vmatpush.bf16.msra.mxu2 %v1768_v21  ;;  %1792 = vmatpush.bf16.msra.mxu3 %v1770_v48  ;;  %v1552_v45 = vsel %vm489_vm14, %v1547_v27, %v1549_v50  ;;  %v1553_v37 = vsel %vm489_vm14, %v1549_v50, %v2852_v20  ;;  %vm2992_vm14 = vcmask 793600  }
 0x4ed   : > { %v1556_v52 = vsel %vm393_vm10, 0, %v1552_v45  ;;  %v1559_v53 = vunpack.c.l.bf16 %v1553_v37  ;;  %vm2993_vm15 = vmmov %vm2992_vm14 }
 0x4ee   : > { %v1558_v57 = vunpack.c.l.bf16 %v1556_v52 }
 0x4ef   : > { %v1561_v58 = vmul.f32 %v1559_v53, %v2663_v17 }
 0x4f0   : > { %v1560_v23 = vmul.f32 %v1558_v57, %v2669_v16 }
 0x4f2   : > { %v1562_v51 = vpack.c.bf16 %v1561_v58, %v1560_v23  ;;  %v1714_v46 = vpop.permute.xlu2 %1713 }
 0x4f3   : > { %v1588_v24 = vpop.permute.xlu1 %1587  ;;  %v1690_v2 = vpop.permute.xlu0 %1689 }
 0x4f4   : > { %v1693_v49 = vsel %vm671_vm4, %v1688_v12, %v1690_v2  ;;  %v1694_v62 = vsel %vm671_vm4, %v1690_v2, %v1692_v35  ;;  %v1581_v20 = vunpack.c.l.b16 %v1562_v51  ;;  %v1582_v60 = vunpack.c.h.b16 %v1562_v51 }
 0x4f5   : > { %v1697_v40 = vsel %vm427_vm11, %v1694_v62, 0  ;;  %v1699_v59 = vunpack.c.l.bf16 %v1693_v49  ;;  %v1591_v56 = vsel %vm2988_vm0, %v1586_v41, %v1588_v24  ;;  %v1592_v55 = vsel %vm2989_vm8, %v1588_v24, %v1590_v38 }
 0x4f6   : > { %v1700_v13 = vunpack.c.l.bf16 %v1697_v40  ;;  %v1583_v26 = vpack.c.b16 %v1581_v20, %v1581_v20  ;;  %v1584_v54 = vpack.c.b16 %v1582_v60, %v1582_v60  ;;  %vm2990_vm11 = vcmask 31744  }
 0x4f7   : > { %v1701_v31 = vmul.f32 %v1699_v59, %v2655_v42  ;;  %vm2991_vm13 = vmmov %vm2990_vm11 }
 0x4f8   : > { %v1702_v1 = vmul.f32 %v1700_v13, %v2652_v34  ;;  %v1600_v10 = vsel %vm469_vm12, %v1583_v26, %v1591_v56  ;;  %v1604_v15 = vsel %vm469_vm12, %v1584_v54, %v1592_v55 }
 0x4f9   : > { %1619 = vmatpush.bf16.msrb.mxu0 %v1600_v10  ;;  %1632 = vmatpush.bf16.msrb.mxu1 %v1604_v15 }
 0x4fa   : > { %v1703_v0 = vpack.c.bf16 %v1702_v1, %v1701_v31 }
 0x4fb   : > { %v1673_v11 = vpop.permute.xlu1 %1672  ;;  %v1671_v63 = vpop.permute.xlu0 %1670  ;;  %1947 = vmatmul.msk.bf16.vlgmr.msra.gmra.mxu2 %vm2990_vm11, %v2754_v44  ;;  %1948 = vmatmul.msk.bf16.vlgmr.msra.gmra.mxu3 %vm2991_vm13, %v2754_v44 }
 0x4fc   : > { %v1677_v42 = vsel %vm2992_vm14, %v1673_v11, %v1675_v4  ;;  %v1676_v34 = vsel %vm2993_vm15, %v1671_v63, %v1673_v11  ;;  %v1718_v5 = vunpack.c.l.b16 %v1703_v0  ;;  %v1719_v14 = vunpack.c.h.b16 %v1703_v0  ;;  %1941 = vmatmul.msk.bf16.vlgmr.msrb.gmra.mxu0 %vm922_vm7, %v2689_v39  ;;  %1942 = vmatmul.msk.bf16.vlgmr.msrb.gmra.mxu1 %vm922_vm7, %v2689_v39 }
 0x4fd   : > { %v1683_v61 = vunpack.c.l.bf16 %v1677_v42  ;;  %v1680_v7 = vsel %vm393_vm10, 0, %v1676_v34  ;;  %vm2994_vm10 = vcmask 785408  }
 0x4fe   : > { %v1682_v28 = vunpack.c.l.bf16 %v1680_v7  ;;  %v1720_v29 = vpack.c.b16 %v1718_v5, %v1718_v5  ;;  %v1721_v19 = vpack.c.b16 %v1719_v14, %v1719_v14  ;;  %vm2995_vm1 = vmmov %vm2994_vm10 }
 0x4ff   : > { %v1685_v44 = vmul.f32 %v1683_v61, %v2663_v17 }
 0x500   : > { %v1684_v9 = vmul.f32 %v1682_v28, %v2669_v16  ;;  %v1731_v43 = vsel %vm469_vm12, %v1720_v29, 0  ;;  %v1734_v33 = vsel %vm469_vm12, %v1721_v19, 0 }
 0x501   : > { %1742 = vmatpush.bf16.msra.mxu0 %v1731_v43  ;;  %1755 = vmatpush.bf16.msra.mxu1 %v1734_v33 }
 0x502   : > { %v1686_v35 = vpack.c.bf16 %v1685_v44, %v1684_v9 }
 0x503   : > { %v1710_v27 = vpop.permute.xlu0 %1709  ;;  %v1712_v8 = vpop.permute.xlu1 %1711 }
 0x504   : > { %v1705_v6 = vunpack.c.l.b16 %v1686_v35  ;;  %v1706_v39 = vunpack.c.h.b16 %v1686_v35  ;;  %v1716_v17 = vsel %vm2994_vm10, %v1712_v8, %v1714_v46  ;;  %v1715_v16 = vsel %vm2995_vm1, %v1710_v27, %v1712_v8 }
 0x506   : > { %v1707_v30 = vpack.c.b16 %v1705_v6, %v1705_v6  ;;  %v1708_v36 = vpack.c.b16 %v1706_v39, %v1706_v39 }
 0x508   : > { %v1724_v32 = vsel %vm469_vm12, %v1707_v30, %v1715_v16  ;;  %v1728_v38 = vsel %vm469_vm12, %v1708_v36, %v1716_v17 }
 0x509   : > { %1743 = vmatpush.bf16.msra.mxu0 %v1724_v32  ;;  %1756 = vmatpush.bf16.msra.mxu1 %v1728_v38 }
 0x50b   : > { %v1133_v22 = vpop.permute.xlu0 %1132 }
 0x50c   : > { %v1135_v47 = vadd.f32 %v1133_v22, %v2796_v25  ;;  %v1136_v21 = vadd.f32 %v1133_v22, %v2798_v18  ;;  %1945 = vmatmul.msk.bf16.vlgmr.msra.gmra.mxu0 %vm922_vm7, %v2727_v3  ;;  %1946 = vmatmul.msk.bf16.vlgmr.msra.gmra.mxu1 %vm922_vm7, %v2727_v3 }
 0x50e   : > { %v1137_v48 = vmax.f32 %v1135_v47, 0.0  ;;  %v1138_v50 = vmax.f32 %v1136_v21, 0.0 }
 0x510   : > { %v1139_v41 = vpack.c.bf16 %v1138_v50, %v1137_v48 }
 0x512   : > { %1140 = vst [vmem:[%s2924_s18] sm:$0xff] %v1139_v41 }
 0x56e   : > { %v1653_v45 = vpop.f32.mrf.mxu2  ;;  %v1666_v37 = vpop.f32.mrf.mxu3 }
 0x576   : > { %v1655_v52 = vpop.f32.mrf.mxu2  ;;  %v1668_v25 = vpop.f32.mrf.mxu3 }
 0x579   : > { %v1621_v53 = vpop.f32.mrf.mxu0  ;;  %v1634_v18 = vpop.f32.mrf.mxu1 }
 0x57a   : > { %v1654_v24 = vadd.f32 %v1653_v45, %v1621_v53  ;;  %v1667_v2 = vadd.f32 %v1666_v37, %v1634_v18 }
 0x57e   : > { %v1781_v57 = vpop.f32.mrf.mxu2  ;;  %v1794_v58 = vpop.f32.mrf.mxu3 }
 0x581   : > { %v1623_v12 = vpop.f32.mrf.mxu0  ;;  %v1636_v23 = vpop.f32.mrf.mxu1 }
 0x586   : > { %v1783_v3 = vpop.f32.mrf.mxu2  ;;  %v1796_v51 = vpop.f32.mrf.mxu3 }
 0x589   : > { %v1745_v49 = vpop.f32.mrf.mxu0  ;;  %v1758_v62 = vpop.f32.mrf.mxu1 }
 0x58a   : > { %v1762_v40 = vadd.f32 %v1745_v49, %v1654_v24  ;;  %v1763_v59 = vadd.f32 %v1758_v62, %v1667_v2 }
 0x58c   : > { %v1798_v20 = vadd.f32 %v1781_v57, %v1762_v40  ;;  %v1799_v60 = vadd.f32 %v1794_v58, %v1763_v59 }
 0x58e   : > { %v1800_v13 = vadd.f32 %v1798_v20, %v1133_v22  ;;  %v1801_v31 = vadd.f32 %v1799_v60, %v1133_v22 }
 0x590   : > { %v1802_v26 = vmax.f32 %v1800_v13, 0.0  ;;  %v1803_v54 = vmax.f32 %v1801_v31, 0.0 }
 0x591   : > { %v1747_v56 = vpop.f32.mrf.mxu0  ;;  %v1760_v55 = vpop.f32.mrf.mxu1 }
 0x592   : > { %v1804_v1 = vpack.c.bf16 %v1803_v54, %v1802_v26 }
 0x594   : > { %1949 = vst [vmem:[%s2924_s18 + $0x8] sm:$0xff] %v1804_v1 }
 0x595   : > { %2122 = shalt.err (!%p2119_p8)
}
 0x596   : > { %s2181_s12 = smov 128   ;;  %s2182_s18 = smov 8  }
 0x597   : > { %1967 = dma.vmem_to_hbm [thread:$0]  (%p2266_p5), %s1822_s21, 256, %s1824_s24, %s1808_s9, %s2181_s12, %s2181_s12, %s2182_s18  }
 0x598 PF: > { %p1984_p9 = scmp.ge.s32.totalorder %s2165_s30, 2  ;;  %s1838_s20 = sand.u32 1, %s2153_s27  }
 0x599   : > { %s1839_s23 = scalar_lea.sflag [#allocation6], %s1838_s20 }
 0x59a   : > { %p1977_p10 = pnand %p1984_p9, %p2270_p6 }
 0x59c   : > { %p1978_p11 = pneg %p1977_p10 }
 0x59e   : > { %2148 = dma.done.wait (%p1978_p11), %s1839_s23, 256  }
 0x59f   : > { %2150 = vsyncadd (%p1978_p11), %s1839_s23, 4294967040  ;;  %p20_p12 = scmp.ge.s32.totalorder %s2253_s11, 4   ;;  %s2996_s27 = smov %s2157_s28 }
 0x5a0   : > { %s2997_s28 = smov %s2161_s29  ;;  %s2998_s29 = smov %s2264_s14 }
 0x5a1   : > { %s2999_s30 = smov %s2253_s11  ;;  %22 = sbr.rel (!%p20_p12) target bundleno = 5 (0x5), region = 108 }
 0x5a6   :  { %1845 = vsyncpa [#allocation5], 1 }
 0x5a7   :  { %1847 = vsyncpa [#allocation5 + $0x1], 1 }
 0x5a8   :  { %1848 = vsyncpa [#allocation8], 1 }
 0x5a9   :  { %1849 = vsyncpa [#allocation6], 1 }
 0x5aa   :  { %1851 = vsyncpa [#allocation6 + $0x1], 1 }

</bundles_post_ra>
